<compile_context>
chip_gen: v7x
topology: tpu7x:2x2x1
jax: 0.10.0
libtpu: 0.0.40
codegen_flags: <defaults>
</compile_context>

<pallas_src>
import functools  # noqa: F401  (kept for easy closure-based variants)
import numpy as np
import jax
import jax.numpy as jnp
from jax.experimental import pallas as pl
from jax.experimental.pallas import tpu as pltpu


def _ceil_to(x, m):
    return ((x + m - 1) // m) * m


# ----------------------------------------------------------------------------
# Pallas kernel
# ----------------------------------------------------------------------------
def gru_actor_kernel(obs_ref, w_ref, b_ref, h0_ref, mu_ref, hn_ref):
    # Shapes (all static):
    #   obs_ref : (T*Bp, Dp)   time-major, batch padded to sublane multiple
    #   w_ref   : (Dp+Ep+2G, 3G)  packed [encW | wih | whh | muW] weight slab
    #   b_ref   : (8, 3G)      rows: 0=encb, 1=bih(folded), 2=bhn, 3=mub
    #   h0_ref  : (Bp, G)      hidden state, lane-padded H -> G
    TB, Dp = obs_ref.shape
    Bp, G = h0_ref.shape
    G2 = 2 * G
    T = TB // Bp
    Ep = w_ref.shape[0] - Dp - 2 * G

    # --- static slab views (sublane/lane aligned row/col offsets) ----------
    encW = w_ref[0:Dp, :Ep]                            # (Dp, Ep)
    wih = w_ref[Dp:Dp + Ep, :]                         # (Ep, 3G)
    whh = w_ref[Dp + Ep:Dp + Ep + G, :]                # (G, 3G)
    muW = w_ref[Dp + Ep + G:Dp + Ep + 2 * G, :G]       # (G, G)

    encb = b_ref[0:1, :Ep]                             # (1, Ep)
    bih = b_ref[1:2, :]                                # (1, 3G)
    mub = b_ref[3:4, :G]                               # (1, G)

    # --- encoder ------------------------------------------------------------
    # TODO(synk): ModalitySpecificEncoder definition not provided in the
    # reference file; stand-in is a linear projection to target_size=40 + ReLU.
    enc = jnp.maximum(
        jnp.dot(obs_ref[...], encW, preferred_element_type=jnp.float32) + encb,
        0.0)                                           # (T*Bp, Ep)

    # --- input-side gate projections for all timesteps (single matmul) ------
    # lane layout per 128-lane slot: [r | z | n]; r/z slots already include the
    # hidden-side biases (folded at packing time), n slot carries only b_in.
    gx = jnp.dot(enc, wih, preferred_element_type=jnp.float32) + bih  # (T*Bp, 3G)

    bhn_b = jnp.broadcast_to(b_ref[2:3, :G], (Bp, G))  # hoisted broadcast

    # --- GRU recurrence, fully unrolled (PyTorch gate order r, z, n) --------
    h = h0_ref[...]                                    # (Bp, G), pad lanes = 0
    for t in range(T):                                 # T static -> unrolled
        xt = gx[t * Bp:(t + 1) * Bp, :]                # contiguous Bp-row slab
        gh = jnp.dot(h, whh, preferred_element_type=jnp.float32)  # (Bp, 3G)
        # r and z in one EUP pass over the contiguous first two lane slots.
        rz = jax.nn.sigmoid(xt[:, :G2] + gh[:, :G2])
        r = rz[:, :G]
        z = rz[:, G:]
        n = jnp.tanh(xt[:, G2:] + r * (gh[:, G2:] + bhn_b))
        h = n + z * (h - n)                            # == (1-z)*n + z*h

    hn_ref[...] = h

    # --- mu head (lane-dense padded output; wrapper slices to action_dim) ---
    mu = jnp.dot(h, muW, preferred_element_type=jnp.float32) + mub
    mu_ref[...] = jnp.clip(mu, -2.0, 2.0)


# ----------------------------------------------------------------------------
# Param packing (once, outside the hot path)
# ----------------------------------------------------------------------------
def prepare_kernel_params(params):
    """Pack all weights/biases into two lane-aligned slabs + precompute sigma."""
    encW = np.asarray(params["encW"], np.float32)      # (D, E)
    D, E = encW.shape
    H = np.asarray(params["whr"]).shape[0]
    A = np.asarray(params["muW"]).shape[1]

    Dp = _ceil_to(D, 8)
    Ep = _ceil_to(E, 128)
    G = _ceil_to(H, 128)
    G3 = 3 * G

    def gate_slotted(triple, rows_out):
        # each gate padded into its own 128-lane slot: [r | z | n]
        out = np.zeros((rows_out, G3), np.float32)
        for k, wk in enumerate(triple):
            wk = np.asarray(wk, np.float32)
            r, c = wk.shape
            out[:r, k * G:k * G + c] = wk
        return out

    wih = gate_slotted((params["wir"], params["wiz"], params["win"]), Ep)  # (Ep, 3G)
    whh = gate_slotted((params["whr"], params["whz"], params["whn"]), G)   # (G, 3G)

    # weight slab rows: [encW | wih | whh | muW]
    R = Dp + Ep + 2 * G
    wslab = np.zeros((R, G3), np.float32)
    wslab[:D, :E] = encW
    wslab[Dp:Dp + Ep, :] = wih
    wslab[Dp + Ep:Dp + Ep + G, :] = whh
    wslab[Dp + Ep + G:Dp + Ep + G + H, :A] = np.asarray(params["muW"], np.float32)

    # bias slab: row0=encb, row1=bih (r/z hidden biases folded), row2=bhn, row3=mub
    bslab = np.zeros((8, G3), np.float32)
    bslab[0, :E] = np.asarray(params["encb"], np.float32).reshape(-1)
    bslab[1, 0:H] = (np.asarray(params["bir"]) + np.asarray(params["bhr"])).reshape(-1)
    bslab[1, G:G + H] = (np.asarray(params["biz"]) + np.asarray(params["bhz"])).reshape(-1)
    bslab[1, 2 * G:2 * G + H] = np.asarray(params["bin"], np.float32).reshape(-1)
    bslab[2, :H] = np.asarray(params["bhn"], np.float32).reshape(-1)
    bslab[3, :A] = np.asarray(params["mub"], np.float32).reshape(-1)

    # sigma is input-independent: precompute once (matches softplus+1e-4, clamp).
    sigma_row = jnp.clip(
        jax.nn.softplus(jnp.asarray(params["logsig"], jnp.float32)) + 1e-4,
        1e-4, 1.0)                                     # (1, A)

    return dict(wslab=jnp.asarray(wslab), bslab=jnp.asarray(bslab),
                sigma_row=sigma_row,
                dims=dict(D=D, Dp=Dp, E=E, Ep=Ep, H=H, G=G, A=A))


# ----------------------------------------------------------------------------
# Wrapper (layout plumbing in XLA: time-major transpose, padding, slicing)
# ----------------------------------------------------------------------------
def gru_actor_forward(kparams, obs, state=None):
    """obs: (B, obs_dim) or (B, T, obs_dim). Returns ((mu, sigma), h_n) like
    the PyTorch module: mu/sigma (B, action_dim), h_n (B, num_layers=1, H)."""
    dims = kparams["dims"]
    D, Dp, H, G, A = dims["D"], dims["Dp"], dims["H"], dims["G"], dims["A"]

    obs = jnp.asarray(obs, jnp.float32)
    if obs.ndim == 2:
        obs = obs[:, None, :]
    B, T, _ = obs.shape
    Bp = _ceil_to(B, 8)

    # Free layout plumbing on the XLA side: time-major, batch padded to a
    # sublane multiple, obs feature dim padded to the slab's encW row count.
    obs_tm = jnp.transpose(obs, (1, 0, 2))                       # (T, B, D)
    obs_tm = jnp.pad(obs_tm, ((0, 0), (0, Bp - B), (0, Dp - D)))
    obs_tm = obs_tm.reshape(T * Bp, Dp)

    if state is None:
        h0 = jnp.zeros((Bp, G), jnp.float32)
    else:
        h0 = jnp.asarray(state, jnp.float32).reshape(B, H)
        h0 = jnp.pad(h0, ((0, Bp - B), (0, G - H)))

    vspec = pl.BlockSpec(memory_space=pltpu.MemorySpace.VMEM)
    mu_pad, hn_pad = pl.pallas_call(
        gru_actor_kernel,
        out_shape=(jax.ShapeDtypeStruct((Bp, G), jnp.float32),
                   jax.ShapeDtypeStruct((Bp, G), jnp.float32)),
        in_specs=[vspec] * 4,
        out_specs=(vspec, vspec),
    )(obs_tm, kparams["wslab"], kparams["bslab"], h0)

    mu = mu_pad[:B, :A]
    hn = hn_pad[:B, :H]
    sigma = jnp.broadcast_to(kparams["sigma_row"], (B, A))

    # PyTorch returns h_n.transpose(0, 1) -> (batch, num_layers=1, hidden)
    return (mu, sigma), hn[:, None, :]


# ----------------------------------------------------------------------------
# Deterministic parameter initialization (mirrors _init_weights schemes)
# ----------------------------------------------------------------------------
def _orthogonal(rng, shape, gain=1.0):
    rows, cols = shape
    a = rng.standard_normal((max(rows, cols), min(rows, cols))).astype(np.float32)
    q, r = np.linalg.qr(a)
    q = q * np.sign(np.diagonal(r))
    if rows < cols:
        q = q.T
    return (gain * q[:rows, :cols]).astype(np.float32)


def _xavier_uniform(rng, shape):  # torch convention (fan_out, fan_in)
    fan_out, fan_in = shape
    bound = float(np.sqrt(6.0 / (fan_in + fan_out)))
    return rng.uniform(-bound, bound, size=shape).astype(np.float32)


def make_params(obs_dim, action_dim, hidden_size, enc_dim=40, seed=0,
                random_biases=False):
    """Unpacked params (weights already transposed to (in, out) layout).
    random_biases=True deviates from the module's zero bias init purely to
    exercise the bias-folding path in the correctness check."""
    rng = np.random.default_rng(seed)
    H = hidden_size

    w_ih = _xavier_uniform(rng, (3 * H, enc_dim))     # xavier_uniform_(weight_ih)
    w_hh = _orthogonal(rng, (3 * H, H))               # orthogonal_(weight_hh)
    mu_w = _orthogonal(rng, (action_dim, H), gain=0.001)
    enc_w = _xavier_uniform(rng, (enc_dim, obs_dim))  # stand-in encoder weight

    wir, wiz, win = np.split(w_ih, 3, axis=0)
    whr, whz, whn = np.split(w_hh, 3, axis=0)

    def bias(n):
        if random_biases:
            return jnp.asarray(rng.uniform(-0.1, 0.1, size=(1, n)).astype(np.float32))
        return jnp.zeros((1, n), jnp.float32)

    return dict(
        encW=jnp.asarray(enc_w.T), encb=bias(enc_dim),
        wir=jnp.asarray(wir.T), wiz=jnp.asarray(wiz.T), win=jnp.asarray(win.T),
        whr=jnp.asarray(whr.T), whz=jnp.asarray(whz.T), whn=jnp.asarray(whn.T),
        bir=bias(H), biz=bias(H), bin=bias(H),
        bhr=bias(H), bhz=bias(H), bhn=bias(H),
        muW=jnp.asarray(mu_w.T), mub=bias(action_dim),
        logsig=jnp.full((1, action_dim), -2.0, jnp.float32),
    )


# ----------------------------------------------------------------------------
# Pure-JAX reference (un-packed params, literal PyTorch GRU semantics)
# ----------------------------------------------------------------------------
def reference_forward(params, obs, state=None):
    obs = jnp.asarray(obs, jnp.float32)
    if obs.ndim == 2:
        obs = obs[:, None, :]
    B, T, D = obs.shape
    H = params["whr"].shape[0]
    enc = jnp.maximum(obs.reshape(B * T, D) @ params["encW"]
                      + params["encb"], 0.0).reshape(B, T, -1)
    h = jnp.zeros((B, H), jnp.float32) if state is None \
        else jnp.asarray(state, jnp.float32).reshape(B, H)
    for t in range(T):
        x = enc[:, t]
        r = jax.nn.sigmoid(x @ params["wir"] + params["bir"]
                           + h @ params["whr"] + params["bhr"])
        z = jax.nn.sigmoid(x @ params["wiz"] + params["biz"]
                           + h @ params["whz"] + params["bhz"])
        n = jnp.tanh(x @ params["win"] + params["bin"]
                     + r * (h @ params["whn"] + params["bhn"]))
        h = (1.0 - z) * n + z * h
    mu = jnp.clip(h @ params["muW"] + params["mub"], -2.0, 2.0)
    sig = jnp.clip(jax.nn.softplus(params["logsig"]) + 1e-4, 1e-4, 1.0)
    return (mu, jnp.broadcast_to(sig, mu.shape)), h[:, None, :]


# ----------------------------------------------------------------------------
if __name__ == "__main__":
    B, T = 4, 8
    OBS_DIM, ACTION_DIM, HIDDEN, ENC_DIM = 16, 6, 32, 40

    # random_biases=True exercises the bias-folding path (forward semantics
    # hold for arbitrary parameter values; module init would set them to 0).
    params = make_params(OBS_DIM, ACTION_DIM, HIDDEN, ENC_DIM, seed=0,
                         random_biases=True)
    kparams = prepare_kernel_params(params)

    key = jax.random.PRNGKey(0)
    obs = jax.random.normal(key, (B, T, OBS_DIM), dtype=jnp.float32)

    # --- sequence path -----------------------------------------------------
    (mu, sigma), h_n = gru_actor_forward(kparams, obs)
    jax.block_until_ready((mu, sigma, h_n))

    (mu_ref, sigma_ref), h_ref = reference_forward(params, obs)
    assert mu.shape == (B, ACTION_DIM) and sigma.shape == (B, ACTION_DIM)
    assert h_n.shape == (B, 1, HIDDEN)
    np.testing.assert_allclose(np.asarray(mu), np.asarray(mu_ref),
                               atol=2e-5, rtol=2e-5)
    np.testing.assert_allclose(np.asarray(sigma), np.asarray(sigma_ref),
                               atol=1e-6, rtol=1e-6)
    np.testing.assert_allclose(np.asarray(h_n), np.asarray(h_ref),
                               atol=2e-5, rtol=2e-5)

    # --- single-step (2D obs) path with carried state ------------------------
    obs1 = jax.random.normal(jax.random.PRNGKey(1), (B, OBS_DIM),
                             dtype=jnp.float32)
    (mu1, sigma1), h_n1 = gru_actor_forward(kparams, obs1, state=h_n)
    jax.block_until_ready((mu1, sigma1, h_n1))
    (mu1_ref, _), h1_ref = reference_forward(params, obs1, state=h_ref)
    np.testing.assert_allclose(np.asarray(mu1), np.asarray(mu1_ref),
                               atol=2e-5, rtol=2e-5)
    np.testing.assert_allclose(np.asarray(h_n1), np.asarray(h1_ref),
                               atol=2e-5, rtol=2e-5)

    print("KERNEL_OK")
</pallas_src>

<mosaic_0001>
module attributes {stable_mosaic.version = 11 : i64} {
  func.func @gru_actor_kernel(%arg0: memref<64x16xf32, #tpu.memory_space<vmem>>, %arg1: memref<400x384xf32, #tpu.memory_space<vmem>>, %arg2: memref<8x384xf32, #tpu.memory_space<vmem>>, %arg3: memref<8x128xf32, #tpu.memory_space<vmem>>, %arg4: memref<8x128xf32, #tpu.memory_space<vmem>>, %arg5: memref<8x128xf32, #tpu.memory_space<vmem>>) attributes {dimension_semantics = [], scalar_prefetch = 0 : i64, scratch_operands = 0 : i64, tpu.core_type = #tpu.core_type<tc>} {
    %c0 = arith.constant 0 : index
    %c0_0 = arith.constant 0 : index
    %0 = vector.load %arg1[%c0, %c0_0] : memref<400x384xf32, #tpu.memory_space<vmem>>, vector<16x128xf32>
    %c16 = arith.constant 16 : index
    %c0_1 = arith.constant 0 : index
    %1 = vector.load %arg1[%c16, %c0_1] : memref<400x384xf32, #tpu.memory_space<vmem>>, vector<128x384xf32>
    %c144 = arith.constant 144 : index
    %c0_2 = arith.constant 0 : index
    %2 = vector.load %arg1[%c144, %c0_2] : memref<400x384xf32, #tpu.memory_space<vmem>>, vector<128x384xf32>
    %c272 = arith.constant 272 : index
    %c0_3 = arith.constant 0 : index
    %3 = vector.load %arg1[%c272, %c0_3] : memref<400x384xf32, #tpu.memory_space<vmem>>, vector<128x128xf32>
    %c0_4 = arith.constant 0 : index
    %c0_5 = arith.constant 0 : index
    %4 = vector.load %arg2[%c0_4, %c0_5] : memref<8x384xf32, #tpu.memory_space<vmem>>, vector<1x128xf32>
    %c1 = arith.constant 1 : index
    %c0_6 = arith.constant 0 : index
    %5 = vector.load %arg2[%c1, %c0_6] : memref<8x384xf32, #tpu.memory_space<vmem>>, vector<1x384xf32>
    %c3 = arith.constant 3 : index
    %c0_7 = arith.constant 0 : index
    %6 = vector.load %arg2[%c3, %c0_7] : memref<8x384xf32, #tpu.memory_space<vmem>>, vector<1x128xf32>
    %c0_8 = arith.constant 0 : index
    %c0_9 = arith.constant 0 : index
    %7 = vector.load %arg0[%c0_8, %c0_9] : memref<64x16xf32, #tpu.memory_space<vmem>>, vector<64x16xf32>
    %cst = arith.constant dense<0.000000e+00> : vector<64x128xf32>
    %8 = tpu.matmul %7, %0, %cst {dimension_numbers = #tpu.dot_dimension_numbers<[1], [0], [0], [1], [0, 0, 1, 1], [], []>} : vector<64x16xf32>, vector<16x128xf32>, vector<64x128xf32> -> vector<64x128xf32>
    %9 = vector.broadcast %4 : vector<1x128xf32> to vector<64x128xf32>
    %10 = arith.addf %8, %9 : vector<64x128xf32>
    %cst_10 = arith.constant 0.000000e+00 : f32
    %11 = vector.broadcast %cst_10 : f32 to vector<64x128xf32>
    %12 = arith.maximumf %10, %11 : vector<64x128xf32>
    %cst_11 = arith.constant dense<0.000000e+00> : vector<64x384xf32>
    %13 = tpu.matmul %12, %1, %cst_11 {dimension_numbers = #tpu.dot_dimension_numbers<[1], [0], [0], [1], [0, 0, 1, 1], [], []>} : vector<64x128xf32>, vector<128x384xf32>, vector<64x384xf32> -> vector<64x384xf32>
    %14 = vector.broadcast %5 : vector<1x384xf32> to vector<64x384xf32>
    %15 = arith.addf %13, %14 : vector<64x384xf32>
    %c2 = arith.constant 2 : index
    %c0_12 = arith.constant 0 : index
    %16 = vector.load %arg2[%c2, %c0_12] : memref<8x384xf32, #tpu.memory_space<vmem>>, vector<1x128xf32>
    %17 = vector.shape_cast %16 : vector<1x128xf32> to vector<1x128xf32>
    %18 = vector.broadcast %17 : vector<1x128xf32> to vector<8x128xf32>
    %c0_13 = arith.constant 0 : index
    %c0_14 = arith.constant 0 : index
    %19 = vector.load %arg3[%c0_13, %c0_14] : memref<8x128xf32, #tpu.memory_space<vmem>>, vector<8x128xf32>
    %20 = vector.extract_strided_slice %15 {offsets = [0, 0], sizes = [8, 384], strides = [1, 1]} : vector<64x384xf32> to vector<8x384xf32>
    %cst_15 = arith.constant dense<0.000000e+00> : vector<8x384xf32>
    %21 = tpu.matmul %19, %2, %cst_15 {dimension_numbers = #tpu.dot_dimension_numbers<[1], [0], [0], [1], [0, 0, 1, 1], [], []>} : vector<8x128xf32>, vector<128x384xf32>, vector<8x384xf32> -> vector<8x384xf32>
    %22 = vector.extract_strided_slice %20 {offsets = [0, 0], sizes = [8, 256], strides = [1, 1]} : vector<8x384xf32> to vector<8x256xf32>
    %23 = vector.extract_strided_slice %21 {offsets = [0, 0], sizes = [8, 256], strides = [1, 1]} : vector<8x384xf32> to vector<8x256xf32>
    %24 = arith.addf %22, %23 : vector<8x256xf32>
    %25 = arith.negf %24 : vector<8x256xf32>
    %26 = math.exp %25 : vector<8x256xf32>
    %cst_16 = arith.constant 1.000000e+00 : f32
    %27 = vector.broadcast %cst_16 : f32 to vector<8x256xf32>
    %28 = arith.addf %27, %26 : vector<8x256xf32>
    %29 = arith.divf %27, %28 : vector<8x256xf32>
    %30 = vector.extract_strided_slice %29 {offsets = [0, 0], sizes = [8, 128], strides = [1, 1]} : vector<8x256xf32> to vector<8x128xf32>
    %31 = vector.extract_strided_slice %29 {offsets = [0, 128], sizes = [8, 128], strides = [1, 1]} : vector<8x256xf32> to vector<8x128xf32>
    %32 = vector.extract_strided_slice %20 {offsets = [0, 256], sizes = [8, 128], strides = [1, 1]} : vector<8x384xf32> to vector<8x128xf32>
    %33 = vector.extract_strided_slice %21 {offsets = [0, 256], sizes = [8, 128], strides = [1, 1]} : vector<8x384xf32> to vector<8x128xf32>
    %34 = arith.addf %33, %18 : vector<8x128xf32>
    %35 = arith.mulf %30, %34 : vector<8x128xf32>
    %36 = arith.addf %32, %35 : vector<8x128xf32>
    %37 = math.tanh %36 : vector<8x128xf32>
    %38 = arith.subf %19, %37 : vector<8x128xf32>
    %39 = arith.mulf %31, %38 : vector<8x128xf32>
    %40 = arith.addf %37, %39 : vector<8x128xf32>
    %41 = vector.extract_strided_slice %15 {offsets = [8, 0], sizes = [8, 384], strides = [1, 1]} : vector<64x384xf32> to vector<8x384xf32>
    %cst_17 = arith.constant dense<0.000000e+00> : vector<8x384xf32>
    %42 = tpu.matmul %40, %2, %cst_17 {dimension_numbers = #tpu.dot_dimension_numbers<[1], [0], [0], [1], [0, 0, 1, 1], [], []>} : vector<8x128xf32>, vector<128x384xf32>, vector<8x384xf32> -> vector<8x384xf32>
    %43 = vector.extract_strided_slice %41 {offsets = [0, 0], sizes = [8, 256], strides = [1, 1]} : vector<8x384xf32> to vector<8x256xf32>
    %44 = vector.extract_strided_slice %42 {offsets = [0, 0], sizes = [8, 256], strides = [1, 1]} : vector<8x384xf32> to vector<8x256xf32>
    %45 = arith.addf %43, %44 : vector<8x256xf32>
    %46 = arith.negf %45 : vector<8x256xf32>
    %47 = math.exp %46 : vector<8x256xf32>
    %cst_18 = arith.constant 1.000000e+00 : f32
    %48 = vector.broadcast %cst_18 : f32 to vector<8x256xf32>
    %49 = arith.addf %48, %47 : vector<8x256xf32>
    %50 = arith.divf %48, %49 : vector<8x256xf32>
    %51 = vector.extract_strided_slice %50 {offsets = [0, 0], sizes = [8, 128], strides = [1, 1]} : vector<8x256xf32> to vector<8x128xf32>
    %52 = vector.extract_strided_slice %50 {offsets = [0, 128], sizes = [8, 128], strides = [1, 1]} : vector<8x256xf32> to vector<8x128xf32>
    %53 = vector.extract_strided_slice %41 {offsets = [0, 256], sizes = [8, 128], strides = [1, 1]} : vector<8x384xf32> to vector<8x128xf32>
    %54 = vector.extract_strided_slice %42 {offsets = [0, 256], sizes = [8, 128], strides = [1, 1]} : vector<8x384xf32> to vector<8x128xf32>
    %55 = arith.addf %54, %18 : vector<8x128xf32>
    %56 = arith.mulf %51, %55 : vector<8x128xf32>
    %57 = arith.addf %53, %56 : vector<8x128xf32>
    %58 = math.tanh %57 : vector<8x128xf32>
    %59 = arith.subf %40, %58 : vector<8x128xf32>
    %60 = arith.mulf %52, %59 : vector<8x128xf32>
    %61 = arith.addf %58, %60 : vector<8x128xf32>
    %62 = vector.extract_strided_slice %15 {offsets = [16, 0], sizes = [8, 384], strides = [1, 1]} : vector<64x384xf32> to vector<8x384xf32>
    %cst_19 = arith.constant dense<0.000000e+00> : vector<8x384xf32>
    %63 = tpu.matmul %61, %2, %cst_19 {dimension_numbers = #tpu.dot_dimension_numbers<[1], [0], [0], [1], [0, 0, 1, 1], [], []>} : vector<8x128xf32>, vector<128x384xf32>, vector<8x384xf32> -> vector<8x384xf32>
    %64 = vector.extract_strided_slice %62 {offsets = [0, 0], sizes = [8, 256], strides = [1, 1]} : vector<8x384xf32> to vector<8x256xf32>
    %65 = vector.extract_strided_slice %63 {offsets = [0, 0], sizes = [8, 256], strides = [1, 1]} : vector<8x384xf32> to vector<8x256xf32>
    %66 = arith.addf %64, %65 : vector<8x256xf32>
    %67 = arith.negf %66 : vector<8x256xf32>
    %68 = math.exp %67 : vector<8x256xf32>
    %cst_20 = arith.constant 1.000000e+00 : f32
    %69 = vector.broadcast %cst_20 : f32 to vector<8x256xf32>
    %70 = arith.addf %69, %68 : vector<8x256xf32>
    %71 = arith.divf %69, %70 : vector<8x256xf32>
    %72 = vector.extract_strided_slice %71 {offsets = [0, 0], sizes = [8, 128], strides = [1, 1]} : vector<8x256xf32> to vector<8x128xf32>
    %73 = vector.extract_strided_slice %71 {offsets = [0, 128], sizes = [8, 128], strides = [1, 1]} : vector<8x256xf32> to vector<8x128xf32>
    %74 = vector.extract_strided_slice %62 {offsets = [0, 256], sizes = [8, 128], strides = [1, 1]} : vector<8x384xf32> to vector<8x128xf32>
    %75 = vector.extract_strided_slice %63 {offsets = [0, 256], sizes = [8, 128], strides = [1, 1]} : vector<8x384xf32> to vector<8x128xf32>
    %76 = arith.addf %75, %18 : vector<8x128xf32>
    %77 = arith.mulf %72, %76 : vector<8x128xf32>
    %78 = arith.addf %74, %77 : vector<8x128xf32>
    %79 = math.tanh %78 : vector<8x128xf32>
    %80 = arith.subf %61, %79 : vector<8x128xf32>
    %81 = arith.mulf %73, %80 : vector<8x128xf32>
    %82 = arith.addf %79, %81 : vector<8x128xf32>
    %83 = vector.extract_strided_slice %15 {offsets = [24, 0], sizes = [8, 384], strides = [1, 1]} : vector<64x384xf32> to vector<8x384xf32>
    %cst_21 = arith.constant dense<0.000000e+00> : vector<8x384xf32>
    %84 = tpu.matmul %82, %2, %cst_21 {dimension_numbers = #tpu.dot_dimension_numbers<[1], [0], [0], [1], [0, 0, 1, 1], [], []>} : vector<8x128xf32>, vector<128x384xf32>, vector<8x384xf32> -> vector<8x384xf32>
    %85 = vector.extract_strided_slice %83 {offsets = [0, 0], sizes = [8, 256], strides = [1, 1]} : vector<8x384xf32> to vector<8x256xf32>
    %86 = vector.extract_strided_slice %84 {offsets = [0, 0], sizes = [8, 256], strides = [1, 1]} : vector<8x384xf32> to vector<8x256xf32>
    %87 = arith.addf %85, %86 : vector<8x256xf32>
    %88 = arith.negf %87 : vector<8x256xf32>
    %89 = math.exp %88 : vector<8x256xf32>
    %cst_22 = arith.constant 1.000000e+00 : f32
    %90 = vector.broadcast %cst_22 : f32 to vector<8x256xf32>
    %91 = arith.addf %90, %89 : vector<8x256xf32>
    %92 = arith.divf %90, %91 : vector<8x256xf32>
    %93 = vector.extract_strided_slice %92 {offsets = [0, 0], sizes = [8, 128], strides = [1, 1]} : vector<8x256xf32> to vector<8x128xf32>
    %94 = vector.extract_strided_slice %92 {offsets = [0, 128], sizes = [8, 128], strides = [1, 1]} : vector<8x256xf32> to vector<8x128xf32>
    %95 = vector.extract_strided_slice %83 {offsets = [0, 256], sizes = [8, 128], strides = [1, 1]} : vector<8x384xf32> to vector<8x128xf32>
    %96 = vector.extract_strided_slice %84 {offsets = [0, 256], sizes = [8, 128], strides = [1, 1]} : vector<8x384xf32> to vector<8x128xf32>
    %97 = arith.addf %96, %18 : vector<8x128xf32>
    %98 = arith.mulf %93, %97 : vector<8x128xf32>
    %99 = arith.addf %95, %98 : vector<8x128xf32>
    %100 = math.tanh %99 : vector<8x128xf32>
    %101 = arith.subf %82, %100 : vector<8x128xf32>
    %102 = arith.mulf %94, %101 : vector<8x128xf32>
    %103 = arith.addf %100, %102 : vector<8x128xf32>
    %104 = vector.extract_strided_slice %15 {offsets = [32, 0], sizes = [8, 384], strides = [1, 1]} : vector<64x384xf32> to vector<8x384xf32>
    %cst_23 = arith.constant dense<0.000000e+00> : vector<8x384xf32>
    %105 = tpu.matmul %103, %2, %cst_23 {dimension_numbers = #tpu.dot_dimension_numbers<[1], [0], [0], [1], [0, 0, 1, 1], [], []>} : vector<8x128xf32>, vector<128x384xf32>, vector<8x384xf32> -> vector<8x384xf32>
    %106 = vector.extract_strided_slice %104 {offsets = [0, 0], sizes = [8, 256], strides = [1, 1]} : vector<8x384xf32> to vector<8x256xf32>
    %107 = vector.extract_strided_slice %105 {offsets = [0, 0], sizes = [8, 256], strides = [1, 1]} : vector<8x384xf32> to vector<8x256xf32>
    %108 = arith.addf %106, %107 : vector<8x256xf32>
    %109 = arith.negf %108 : vector<8x256xf32>
    %110 = math.exp %109 : vector<8x256xf32>
    %cst_24 = arith.constant 1.000000e+00 : f32
    %111 = vector.broadcast %cst_24 : f32 to vector<8x256xf32>
    %112 = arith.addf %111, %110 : vector<8x256xf32>
    %113 = arith.divf %111, %112 : vector<8x256xf32>
    %114 = vector.extract_strided_slice %113 {offsets = [0, 0], sizes = [8, 128], strides = [1, 1]} : vector<8x256xf32> to vector<8x128xf32>
    %115 = vector.extract_strided_slice %113 {offsets = [0, 128], sizes = [8, 128], strides = [1, 1]} : vector<8x256xf32> to vector<8x128xf32>
    %116 = vector.extract_strided_slice %104 {offsets = [0, 256], sizes = [8, 128], strides = [1, 1]} : vector<8x384xf32> to vector<8x128xf32>
    %117 = vector.extract_strided_slice %105 {offsets = [0, 256], sizes = [8, 128], strides = [1, 1]} : vector<8x384xf32> to vector<8x128xf32>
    %118 = arith.addf %117, %18 : vector<8x128xf32>
    %119 = arith.mulf %114, %118 : vector<8x128xf32>
    %120 = arith.addf %116, %119 : vector<8x128xf32>
    %121 = math.tanh %120 : vector<8x128xf32>
    %122 = arith.subf %103, %121 : vector<8x128xf32>
    %123 = arith.mulf %115, %122 : vector<8x128xf32>
    %124 = arith.addf %121, %123 : vector<8x128xf32>
    %125 = vector.extract_strided_slice %15 {offsets = [40, 0], sizes = [8, 384], strides = [1, 1]} : vector<64x384xf32> to vector<8x384xf32>
    %cst_25 = arith.constant dense<0.000000e+00> : vector<8x384xf32>
    %126 = tpu.matmul %124, %2, %cst_25 {dimension_numbers = #tpu.dot_dimension_numbers<[1], [0], [0], [1], [0, 0, 1, 1], [], []>} : vector<8x128xf32>, vector<128x384xf32>, vector<8x384xf32> -> vector<8x384xf32>
    %127 = vector.extract_strided_slice %125 {offsets = [0, 0], sizes = [8, 256], strides = [1, 1]} : vector<8x384xf32> to vector<8x256xf32>
    %128 = vector.extract_strided_slice %126 {offsets = [0, 0], sizes = [8, 256], strides = [1, 1]} : vector<8x384xf32> to vector<8x256xf32>
    %129 = arith.addf %127, %128 : vector<8x256xf32>
    %130 = arith.negf %129 : vector<8x256xf32>
    %131 = math.exp %130 : vector<8x256xf32>
    %cst_26 = arith.constant 1.000000e+00 : f32
    %132 = vector.broadcast %cst_26 : f32 to vector<8x256xf32>
    %133 = arith.addf %132, %131 : vector<8x256xf32>
    %134 = arith.divf %132, %133 : vector<8x256xf32>
    %135 = vector.extract_strided_slice %134 {offsets = [0, 0], sizes = [8, 128], strides = [1, 1]} : vector<8x256xf32> to vector<8x128xf32>
    %136 = vector.extract_strided_slice %134 {offsets = [0, 128], sizes = [8, 128], strides = [1, 1]} : vector<8x256xf32> to vector<8x128xf32>
    %137 = vector.extract_strided_slice %125 {offsets = [0, 256], sizes = [8, 128], strides = [1, 1]} : vector<8x384xf32> to vector<8x128xf32>
    %138 = vector.extract_strided_slice %126 {offsets = [0, 256], sizes = [8, 128], strides = [1, 1]} : vector<8x384xf32> to vector<8x128xf32>
    %139 = arith.addf %138, %18 : vector<8x128xf32>
    %140 = arith.mulf %135, %139 : vector<8x128xf32>
    %141 = arith.addf %137, %140 : vector<8x128xf32>
    %142 = math.tanh %141 : vector<8x128xf32>
    %143 = arith.subf %124, %142 : vector<8x128xf32>
    %144 = arith.mulf %136, %143 : vector<8x128xf32>
    %145 = arith.addf %142, %144 : vector<8x128xf32>
    %146 = vector.extract_strided_slice %15 {offsets = [48, 0], sizes = [8, 384], strides = [1, 1]} : vector<64x384xf32> to vector<8x384xf32>
    %cst_27 = arith.constant dense<0.000000e+00> : vector<8x384xf32>
    %147 = tpu.matmul %145, %2, %cst_27 {dimension_numbers = #tpu.dot_dimension_numbers<[1], [0], [0], [1], [0, 0, 1, 1], [], []>} : vector<8x128xf32>, vector<128x384xf32>, vector<8x384xf32> -> vector<8x384xf32>
    %148 = vector.extract_strided_slice %146 {offsets = [0, 0], sizes = [8, 256], strides = [1, 1]} : vector<8x384xf32> to vector<8x256xf32>
    %149 = vector.extract_strided_slice %147 {offsets = [0, 0], sizes = [8, 256], strides = [1, 1]} : vector<8x384xf32> to vector<8x256xf32>
    %150 = arith.addf %148, %149 : vector<8x256xf32>
    %151 = arith.negf %150 : vector<8x256xf32>
    %152 = math.exp %151 : vector<8x256xf32>
    %cst_28 = arith.constant 1.000000e+00 : f32
    %153 = vector.broadcast %cst_28 : f32 to vector<8x256xf32>
    %154 = arith.addf %153, %152 : vector<8x256xf32>
    %155 = arith.divf %153, %154 : vector<8x256xf32>
    %156 = vector.extract_strided_slice %155 {offsets = [0, 0], sizes = [8, 128], strides = [1, 1]} : vector<8x256xf32> to vector<8x128xf32>
    %157 = vector.extract_strided_slice %155 {offsets = [0, 128], sizes = [8, 128], strides = [1, 1]} : vector<8x256xf32> to vector<8x128xf32>
    %158 = vector.extract_strided_slice %146 {offsets = [0, 256], sizes = [8, 128], strides = [1, 1]} : vector<8x384xf32> to vector<8x128xf32>
    %159 = vector.extract_strided_slice %147 {offsets = [0, 256], sizes = [8, 128], strides = [1, 1]} : vector<8x384xf32> to vector<8x128xf32>
    %160 = arith.addf %159, %18 : vector<8x128xf32>
    %161 = arith.mulf %156, %160 : vector<8x128xf32>
    %162 = arith.addf %158, %161 : vector<8x128xf32>
    %163 = math.tanh %162 : vector<8x128xf32>
    %164 = arith.subf %145, %163 : vector<8x128xf32>
    %165 = arith.mulf %157, %164 : vector<8x128xf32>
    %166 = arith.addf %163, %165 : vector<8x128xf32>
    %167 = vector.extract_strided_slice %15 {offsets = [56, 0], sizes = [8, 384], strides = [1, 1]} : vector<64x384xf32> to vector<8x384xf32>
    %cst_29 = arith.constant dense<0.000000e+00> : vector<8x384xf32>
    %168 = tpu.matmul %166, %2, %cst_29 {dimension_numbers = #tpu.dot_dimension_numbers<[1], [0], [0], [1], [0, 0, 1, 1], [], []>} : vector<8x128xf32>, vector<128x384xf32>, vector<8x384xf32> -> vector<8x384xf32>
    %169 = vector.extract_strided_slice %167 {offsets = [0, 0], sizes = [8, 256], strides = [1, 1]} : vector<8x384xf32> to vector<8x256xf32>
    %170 = vector.extract_strided_slice %168 {offsets = [0, 0], sizes = [8, 256], strides = [1, 1]} : vector<8x384xf32> to vector<8x256xf32>
    %171 = arith.addf %169, %170 : vector<8x256xf32>
    %172 = arith.negf %171 : vector<8x256xf32>
    %173 = math.exp %172 : vector<8x256xf32>
    %cst_30 = arith.constant 1.000000e+00 : f32
    %174 = vector.broadcast %cst_30 : f32 to vector<8x256xf32>
    %175 = arith.addf %174, %173 : vector<8x256xf32>
    %176 = arith.divf %174, %175 : vector<8x256xf32>
    %177 = vector.extract_strided_slice %176 {offsets = [0, 0], sizes = [8, 128], strides = [1, 1]} : vector<8x256xf32> to vector<8x128xf32>
    %178 = vector.extract_strided_slice %176 {offsets = [0, 128], sizes = [8, 128], strides = [1, 1]} : vector<8x256xf32> to vector<8x128xf32>
    %179 = vector.extract_strided_slice %167 {offsets = [0, 256], sizes = [8, 128], strides = [1, 1]} : vector<8x384xf32> to vector<8x128xf32>
    %180 = vector.extract_strided_slice %168 {offsets = [0, 256], sizes = [8, 128], strides = [1, 1]} : vector<8x384xf32> to vector<8x128xf32>
    %181 = arith.addf %180, %18 : vector<8x128xf32>
    %182 = arith.mulf %177, %181 : vector<8x128xf32>
    %183 = arith.addf %179, %182 : vector<8x128xf32>
    %184 = math.tanh %183 : vector<8x128xf32>
    %185 = arith.subf %166, %184 : vector<8x128xf32>
    %186 = arith.mulf %178, %185 : vector<8x128xf32>
    %187 = arith.addf %184, %186 : vector<8x128xf32>
    %c0_31 = arith.constant 0 : index
    %c0_32 = arith.constant 0 : index
    %188 = vector.load %arg5[%c0_31, %c0_32] : memref<8x128xf32, #tpu.memory_space<vmem>>, vector<8x128xf32>
    tpu.vector_store %arg5[%c0_31, %c0_32], %187 {strides = array<i32>} : memref<8x128xf32, #tpu.memory_space<vmem>>, vector<8x128xf32>,
    %cst_33 = arith.constant dense<0.000000e+00> : vector<8x128xf32>
    %189 = tpu.matmul %187, %3, %cst_33 {dimension_numbers = #tpu.dot_dimension_numbers<[1], [0], [0], [1], [0, 0, 1, 1], [], []>} : vector<8x128xf32>, vector<128x128xf32>, vector<8x128xf32> -> vector<8x128xf32>
    %190 = vector.broadcast %6 : vector<1x128xf32> to vector<8x128xf32>
    %191 = arith.addf %189, %190 : vector<8x128xf32>
    %cst_34 = arith.constant -2.000000e+00 : f32
    %cst_35 = arith.constant 2.000000e+00 : f32
    %192 = vector.broadcast %cst_34 : f32 to vector<8x128xf32>
    %193 = arith.maximumf %192, %191 : vector<8x128xf32>
    %194 = vector.broadcast %cst_35 : f32 to vector<8x128xf32>
    %195 = arith.minimumf %194, %193 : vector<8x128xf32>
    %c0_36 = arith.constant 0 : index
    %c0_37 = arith.constant 0 : index
    %196 = vector.load %arg4[%c0_36, %c0_37] : memref<8x128xf32, #tpu.memory_space<vmem>>, vector<8x128xf32>
    tpu.vector_store %arg4[%c0_36, %c0_37], %195 {strides = array<i32>} : memref<8x128xf32, #tpu.memory_space<vmem>>, vector<8x128xf32>,
    return
  }
}

</mosaic_0001>

<bundles_post_ra>
// kernel: tpu_custom_call.1
= control target key start
LH: loop header
LB: loop body
LE: loop exit
PB: predicated region body
PF: predicated region fallthrough
CT: control target
= control target key end

     0   :  { %11 = vsyncpa [#allocation3], 0  ;;  %s3809_s0 = inlined_call_operand.vmem [shape: f32[64,16], index: 0, kind: input, shape index: {}]   ;;  %s3810_s1 = inlined_call_operand.hbm [shape: f32[400,384], index: 1, kind: input, shape index: {}]   ;;  %s3811_s2 = inlined_call_operand.vmem [shape: f32[8,384], index: 2, kind: input, shape index: {}]   ;;  %s3812_s3 = inlined_call_operand.vmem [shape: f32[8,128], index: 3, kind: input, shape index: {}]   ;;  %s3813_s4 = inlined_call_operand.hbm [shape: f32[8,128], index: 4, kind: output, shape index: {0}]   ;;  %s3814_s5 = inlined_call_operand.hbm [shape: f32[8,128], index: 5, kind: output, shape index: {1}]  }
   0x1   :  { %12 = vsyncpa [#allocation4], 0 }
   0x2   :  { %13 = vsyncpa [#allocation7], 0  ;;  %s3254_s18 = smov [#allocation2]   ;;  %s3182_s22 = scalar_lea.hbm %s3810_s1, 19200 }
   0x3   :  { %s21_s19 = sshll.u32 %s3254_s18, 4  ;;  %p3183_p0 = scmp.ne.s32.totalorder %s3810_s1, %s3182_s22  ;;  %s22_s19 = int_to_ptr.vmem [resolvable:$true] %s21_s19 }
   0x4   :  { %p3186_p1 = scmp.lt.u32.totalorder %s3182_s22, %s3810_s1 }
   0x6   :  { %p3188_p2 = pnand %p3186_p1, %p3183_p0 }
   0x8   :  { %3191 = shalt.err (!%p3188_p2)
}
   0x9   :  { %s3192_s27 = scalar_lea.vmem %s22_s19, 19200  ;;  %p3197_p4 = scmp.lt.s32.totalorder %s22_s19, %s22_s19 }
   0xa   :  { %p3193_p3 = scmp.ne.s32.totalorder %s22_s19, %s3192_s27  ;;  %p3198_p5 = scmp.lt.s32.totalorder %s3192_s27, %s3192_s27 }
   0xc   :  { %p3199_p6 = por %p3198_p5, %p3197_p4 }
   0xe   :  { %p3200_p7 = pnand %p3199_p6, %p3193_p3 }
  0x10   :  { %3203 = shalt.err (!%p3200_p7)
}
  0x11   :  { %s3255_s28 = smov 384   ;;  %s3256_s29 = smov 24  }
  0x12   :  { %27 = dma.hbm_to_vmem [thread:$0]  %s3810_s1, 19200, %s22_s19, [#allocation3], %s3255_s28, %s3255_s28, %s3256_s29  }
  0x13   :  { %3248 = dma.done.wait [#allocation3], 19200  }
  0x14   :  { %3249 = vsyncadd [#allocation3], 4294948096  ;;  %vm161_vm0 = vcmask 130048   ;;  %v35_v0 = vld [vmem:[#allocation2] sm:$0xff]  ;;  %v36_v1 = vld [vmem:[#allocation2 + $0x18] sm:$0xff]  ;;  %vm3259_vm1 = vmmov 0  }
  0x15   :  { %v153_v2 = vld [vmem:[%s3809_s0] sm:$0xff]  ;;  %v2522_v3 = vpack.c.bf16 %v36_v1, %v35_v0  ;;  %v154_v4 = vld [vmem:[%s3809_s0 + $0x8] sm:$0xff]  ;;  %v155_v5 = vld [vmem:[%s3809_s0 + $0x10] sm:$0xff]  ;;  %s3260_s28 = smov [#allocation6]  }
  0x16   :  { %2151 = vmatprep.mubr.msk.f32.mxu0 %vm161_vm0, %v153_v2  ;;  %v38_v6 = vld [vmem:[#allocation2 + $0x38] sm:$0xff]  ;;  %v41_v7 = vld [vmem:[#allocation2 + $0x50] sm:$0xff]  ;;  %v40_v10 = vld [vmem:[#allocation2 + $0x48] sm:$0xff]  ;;  %s1921_s29 = sshll.u32 %s3260_s28, 4  ;;  %s1922_s29 = int_to_ptr.vmem [resolvable:$true] %s1921_s29 }
  0x17   :  { %2523 = vmatprep.subr.bf16.mxu0 %v2522_v3  ;;  %v2526_v8 = vpack.c.bf16 %v41_v7, %v38_v6  ;;  %v37_v9 = vld [vmem:[#allocation2 + $0x30] sm:$0xff]  ;;  %v39_v11 = vld [vmem:[#allocation2 + $0x40] sm:$0xff]  ;;  %v42_v13 = vld [vmem:[#allocation2 + $0x58] sm:$0xff]  ;;  %s3204_s30 = scalar_lea.vmem %s1922_s29, 128  ;;  %p3209_p9 = scmp.lt.s32.totalorder %s1922_s29, %s1922_s29 }
  0x18   :  { %2525 = vmatpush3.bf16.msra.mxu0 %v2522_v3  ;;  %v2528_v12 = vpack.c.bf16 %v40_v10, %v37_v9  ;;  %v44_v14 = vld [vmem:[#allocation2 + $0x68] sm:$0xff]  ;;  %v47_v15 = vld [vmem:[#allocation2 + $0x80] sm:$0xff]  ;;  %v2558_v17 = vpack.c.bf16 %v42_v13, %v39_v11  ;;  %v46_v20 = vld [vmem:[#allocation2 + $0x78] sm:$0xff]  ;;  %p3205_p8 = scmp.ne.s32.totalorder %s1922_s29, %s3204_s30  ;;  %p3210_p10 = scmp.lt.s32.totalorder %s3204_s30, %s3204_s30 }
  0x19   :  { %v156_v16 = vld [vmem:[%s3809_s0 + $0x18] sm:$0xff]  ;;  %2527 = vmatprep.subr.bf16.mxu1 %v2526_v8  ;;  %v2530_v18 = vpack.c.bf16 %v47_v15, %v44_v14  ;;  %v45_v21 = vld [vmem:[#allocation2 + $0x70] sm:$0xff]  ;;  %v157_v22 = vld [vmem:[%s3809_s0 + $0x20] sm:$0xff] }
  0x1a   :  { %v43_v19 = vld [vmem:[#allocation2 + $0x60] sm:$0xff]  ;;  %2529 = vmatpush1.bf16.msra.mxu1 %v2528_v12  ;;  %v48_v24 = vld [vmem:[#allocation2 + $0x88] sm:$0xff]  ;;  %v50_v25 = vld [vmem:[#allocation2 + $0x98] sm:$0xff]  ;;  %2559 = vmatprep.subr.bf16.mxu0 %v2558_v17  ;;  %p3211_p11 = por %p3210_p10, %p3209_p9 }
  0x1b   :  { %2152 = vmatmul.mubr.msk.f32.vlgmr.msra.gmra.mrb[0].mxu0 %vm161_vm0, %v154_v4  ;;  %v2532_v23 = vpack.c.bf16 %v46_v20, %v43_v19  ;;  %v53_v26 = vld [vmem:[#allocation2 + $0xb0] sm:$0xff]  ;;  %v2562_v27 = vpack.c.bf16 %v48_v24, %v45_v21  ;;  %v52_v30 = vld [vmem:[#allocation2 + $0xa8] sm:$0xff]  ;;  %v51_v31 = vld [vmem:[#allocation2 + $0xa0] sm:$0xff]  ;;  %2531 = vmatprep.subr.bf16.mxu1 %v2530_v18 }
  0x1c   :  { %2154 = vmatprep.mubr.msk.f32.mxu0 %vm161_vm0, %v155_v5  ;;  %v2534_v28 = vpack.c.bf16 %v53_v26, %v50_v25  ;;  %v49_v29 = vld [vmem:[#allocation2 + $0x90] sm:$0xff]  ;;  %2561 = vmatpush3.bf16.msra.mxu0 %v2558_v17  ;;  %v54_v32 = vld [vmem:[#allocation2 + $0xb8] sm:$0xff]  ;;  %v56_v33 = vld [vmem:[#allocation2 + $0xc8] sm:$0xff]  ;;  %p3212_p12 = pnand %p3211_p11, %p3205_p8 }
  0x1d   :  { %v59_v34 = vld [vmem:[#allocation2 + $0xe0] sm:$0xff]  ;;  %2563 = vmatprep.subr.bf16.mxu0 %v2562_v27  ;;  %v2566_v35 = vpack.c.bf16 %v54_v32, %v51_v31  ;;  %v2536_v36 = vpack.c.bf16 %v52_v30, %v49_v29  ;;  %v57_v37 = vld [vmem:[#allocation2 + $0xd0] sm:$0xff]  ;;  %v60_v38 = vld [vmem:[#allocation2 + $0xe8] sm:$0xff] }
  0x1e   :  { %2533 = vmatpush1.bf16.msra.mxu1 %v2532_v23  ;;  %v158_v39 = vld [vmem:[%s3809_s0 + $0x28] sm:$0xff]  ;;  %v2538_v40 = vpack.c.bf16 %v59_v34, %v56_v33  ;;  %v55_v41 = vld [vmem:[#allocation2 + $0xc0] sm:$0xff]  ;;  %v58_v42 = vld [vmem:[#allocation2 + $0xd8] sm:$0xff]  ;;  %v2570_v46 = vpack.c.bf16 %v60_v38, %v57_v37  ;;  %v3258_v23 = vmov 0.0|0.0  }
  0x1f   :  { %2155 = vmatmul.mubr.msk.f32.gmra.mrb[2].mxu0 %vm161_vm0, %v156_v16  ;;  %2535 = vmatprep.subr.bf16.mxu1 %v2534_v28  ;;  %v159_v43 = vld [vmem:[%s3809_s0 + $0x30] sm:$0xff]  ;;  %v65_v45 = vld [vmem:[#allocation2 + $0x110] sm:$0xff]  ;;  %v2540_v47 = vpack.c.bf16 %v58_v42, %v55_v41  ;;  %v63_v48 = vld [vmem:[#allocation2 + $0x100] sm:$0xff] }
  0x20   :  { %2157 = vmatprep.mubr.msk.f32.mxu0 %vm161_vm0, %v157_v22  ;;  %2565 = vmatpush3.bf16.msra.mxu0 %v2562_v27  ;;  %v62_v44 = vld [vmem:[#allocation2 + $0xf8] sm:$0xff]  ;;  %v160_v50 = vld [vmem:[%s3809_s0 + $0x38] sm:$0xff]  ;;  %v61_v52 = vld [vmem:[#allocation2 + $0xf0] sm:$0xff]  ;;  %v3257_v22 = vmov 0.0  }
  0x21   :  { %2567 = vmatprep.subr.bf16.mxu0 %v2566_v35  ;;  %v66_v49 = vld [vmem:[#allocation2 + $0x118] sm:$0xff]  ;;  %v2542_v51 = vpack.c.bf16 %v65_v45, %v62_v44  ;;  %v64_v53 = vld [vmem:[#allocation2 + $0x108] sm:$0xff]  ;;  %v71_v55 = vld [vmem:[#allocation2 + $0x140] sm:$0xff]  ;;  %379 = vmatprep.mubr.f32.mxu1 %v3257_v22 }
  0x22   :  { %2537 = vmatpush1.bf16.msra.mxu1 %v2536_v36  ;;  %v68_v54 = vld [vmem:[#allocation2 + $0x128] sm:$0xff]  ;;  %v2574_v56 = vpack.c.bf16 %v66_v49, %v63_v48  ;;  %v2544_v57 = vpack.c.bf16 %v64_v53, %v61_v52  ;;  %v69_v58 = vld [vmem:[#allocation2 + $0x130] sm:$0xff]  ;;  %v67_v61 = vld [vmem:[#allocation2 + $0x120] sm:$0xff] }
  0x23   :  { %2158 = vmatmul.mubr.msk.f32.gmra.mrb[4].mxu0 %vm161_vm0, %v158_v39  ;;  %2539 = vmatprep.subr.bf16.mxu1 %v2538_v40  ;;  %v72_v59 = vld [vmem:[#allocation2 + $0x148] sm:$0xff]  ;;  %v2546_v60 = vpack.c.bf16 %v71_v55, %v68_v54  ;;  %v70_v62 = vld [vmem:[#allocation2 + $0x138] sm:$0xff]  ;;  %v77_v0 = vld [vmem:[#allocation2 + $0x170] sm:$0xff] }
  0x24   :  { %2160 = vmatprep.mubr.msk.f32.mxu0 %vm161_vm0, %v159_v43  ;;  %2569 = vmatpush3.bf16.msra.mxu0 %v2566_v35  ;;  %v74_v63 = vld [vmem:[#allocation2 + $0x158] sm:$0xff]  ;;  %v2578_v1 = vpack.c.bf16 %v72_v59, %v69_v58  ;;  %v2548_v2 = vpack.c.bf16 %v70_v62, %v67_v61  ;;  %v75_v3 = vld [vmem:[#allocation2 + $0x160] sm:$0xff]  ;;  %v73_v6 = vld [vmem:[#allocation2 + $0x150] sm:$0xff] }
  0x25   :  { %2571 = vmatprep.subr.bf16.mxu0 %v2570_v46  ;;  %v78_v4 = vld [vmem:[#allocation2 + $0x178] sm:$0xff]  ;;  %v2550_v5 = vpack.c.bf16 %v77_v0, %v74_v63  ;;  %v76_v7 = vld [vmem:[#allocation2 + $0x168] sm:$0xff]  ;;  %v83_v11 = vld [vmem:[#allocation2 + $0x1a0] sm:$0xff] }
  0x26   :  { %2541 = vmatpush1.bf16.msra.mxu1 %v2540_v47  ;;  %v2582_v8 = vpack.c.bf16 %v78_v4, %v75_v3  ;;  %v2552_v9 = vpack.c.bf16 %v76_v7, %v73_v6  ;;  %v80_v10 = vld [vmem:[#allocation2 + $0x188] sm:$0xff]  ;;  %v79_v13 = vld [vmem:[#allocation2 + $0x180] sm:$0xff]  ;;  %v82_v14 = vld [vmem:[#allocation2 + $0x198] sm:$0xff] }
  0x27   :  { %2161 = vmatmul.mubr.msk.f32.gmra.mrb[6].mxu0 %vm161_vm0, %v160_v50  ;;  %2543 = vmatprep.subr.bf16.mxu1 %v2542_v51  ;;  %v2554_v12 = vpack.c.bf16 %v83_v11, %v80_v10  ;;  %v2556_v15 = vpack.c.bf16 %v82_v14, %v79_v13  ;;  %v81_v16 = vld [vmem:[#allocation2 + $0x190] sm:$0xff]  ;;  %v84_v17 = vld [vmem:[#allocation2 + $0x1a8] sm:$0xff]  ;;  %v86_v19 = vld [vmem:[#allocation2 + $0x1b8] sm:$0xff] }
  0x28   :  { %2573 = vmatpush3.bf16.msra.mxu0 %v2570_v46  ;;  %v2586_v18 = vpack.c.bf16 %v84_v17, %v81_v16  ;;  %v89_v20 = vld [vmem:[#allocation2 + $0x1d0] sm:$0xff]  ;;  %v3344_v24 = vld [vmem:[%s3811_s2] ss:$0 sm:$0xff]  ;;  %v95_v31 = vld [vmem:[#allocation2 + $0x200] sm:$0xff] }
  0x29   :  { %2575 = vmatprep.subr.bf16.mxu0 %v2574_v56  ;;  %v3336_v21 = vpack.c.bf16 %v89_v20, %v86_v19  ;;  %v85_v26 = vld [vmem:[#allocation2 + $0x1b0] sm:$0xff]  ;;  %v88_v27 = vld [vmem:[#allocation2 + $0x1c8] sm:$0xff]  ;;  %v87_v33 = vld [vmem:[#allocation2 + $0x1c0] sm:$0xff] }
  0x2a   :  { %2545 = vmatpush1.bf16.msra.mxu1 %v2544_v57  ;;  %v92_v30 = vld [vmem:[#allocation2 + $0x1e8] sm:$0xff]  ;;  %v90_v34 = vld [vmem:[#allocation2 + $0x1d8] sm:$0xff]  ;;  %v3348_v35 = vpack.c.bf16 %v88_v27, %v85_v26  ;;  %v91_v39 = vld [vmem:[#allocation2 + $0x1e0] sm:$0xff] }
  0x2b   :  { %2547 = vmatprep.subr.bf16.mxu1 %v2546_v60  ;;  %v3350_v38 = vpack.c.bf16 %v95_v31, %v92_v30  ;;  %v94_v40 = vld [vmem:[#allocation2 + $0x1f8] sm:$0xff]  ;;  %v101_v45 = vld [vmem:[#allocation2 + $0x230] sm:$0xff]  ;;  %v3355_v46 = vpack.c.bf16 %v90_v34, %v87_v33  ;;  %v100_v54 = vld [vmem:[#allocation2 + $0x228] sm:$0xff] }
  0x2c   :  { %2577 = vmatpush3.bf16.msra.mxu0 %v2574_v56  ;;  %v98_v44 = vld [vmem:[#allocation2 + $0x218] sm:$0xff]  ;;  %v3360_v49 = vpack.c.bf16 %v94_v40, %v91_v39  ;;  %v97_v53 = vld [vmem:[#allocation2 + $0x210] sm:$0xff]  ;;  %v104_v57 = vld [vmem:[#allocation2 + $0x248] sm:$0xff] }
  0x2d   :  { %2579 = vmatprep.subr.bf16.mxu0 %v2578_v1  ;;  %v3364_v52 = vpack.c.bf16 %v101_v45, %v98_v44  ;;  %v107_v58 = vld [vmem:[#allocation2 + $0x260] sm:$0xff]  ;;  %v93_v60 = vld [vmem:[#allocation2 + $0x1f0] sm:$0xff]  ;;  %v96_v61 = vld [vmem:[#allocation2 + $0x208] sm:$0xff]  ;;  %v3372_v62 = vpack.c.bf16 %v100_v54, %v97_v53 }
  0x2e   :  { %2549 = vmatpush1.bf16.msra.mxu1 %v2548_v2  ;;  %v103_v2 = vld [vmem:[#allocation2 + $0x240] sm:$0xff]  ;;  %v106_v3 = vld [vmem:[#allocation2 + $0x258] sm:$0xff]  ;;  %v113_v7 = vld [vmem:[#allocation2 + $0x290] sm:$0xff] }
  0x2f   :  { %2551 = vmatprep.subr.bf16.mxu1 %v2550_v5  ;;  %v110_v6 = vld [vmem:[#allocation2 + $0x278] sm:$0xff]  ;;  %v3388_v11 = vpack.c.bf16 %v106_v3, %v103_v2  ;;  %v109_v17 = vld [vmem:[#allocation2 + $0x270] sm:$0xff]  ;;  %v116_v19 = vld [vmem:[#allocation2 + $0x2a8] sm:$0xff] }
  0x30   :  { %2581 = vmatpush3.bf16.msra.mxu0 %v2578_v1  ;;  %v3377_v1 = vpack.c.bf16 %v107_v58, %v104_v57  ;;  %v102_v13 = vld [vmem:[#allocation2 + $0x238] sm:$0xff]  ;;  %v119_v20 = vld [vmem:[#allocation2 + $0x2c0] sm:$0xff]  ;;  %v105_v26 = vld [vmem:[#allocation2 + $0x250] sm:$0xff] }
  0x31   :  { %2583 = vmatprep.subr.bf16.mxu0 %v2582_v8  ;;  %v108_v27 = vld [vmem:[#allocation2 + $0x268] sm:$0xff]  ;;  %v118_v30 = vld [vmem:[#allocation2 + $0x2b8] sm:$0xff]  ;;  %v121_v40 = vld [vmem:[#allocation2 + $0x2d0] sm:$0xff] }
  0x32   :  { %2553 = vmatpush1.bf16.msra.mxu1 %v2552_v9  ;;  %v3383_v9 = vpack.c.bf16 %v96_v61, %v93_v60  ;;  %v122_v31 = vld [vmem:[#allocation2 + $0x2d8] sm:$0xff]  ;;  %v3412_v33 = vpack.c.bf16 %v108_v27, %v105_v26  ;;  %v129_v60 = vld [vmem:[#allocation2 + $0x310] sm:$0xff]  ;;  %v132_v61 = vld [vmem:[#allocation2 + $0x328] sm:$0xff] }
  0x33   :  { %2555 = vmatprep.subr.bf16.mxu1 %v2554_v12  ;;  %v99_v12 = vld [vmem:[#allocation2 + $0x220] sm:$0xff]  ;;  %v130_v53 = vld [vmem:[#allocation2 + $0x318] sm:$0xff] }
  0x34   :  { %2585 = vmatpush3.bf16.msra.mxu0 %v2582_v8  ;;  %v126_v57 = vld [vmem:[#allocation2 + $0x2f8] sm:$0xff] }
  0x35   :  { %2587 = vmatprep.subr.bf16.mxu0 %v2586_v18 }
  0x36   :  { %2557 = vmatpush1.bf16.msra.mxu1 %v2556_v15  ;;  %v3394_v15 = vpack.c.bf16 %v113_v7, %v110_v6 }
  0x37   :  { %2591 = vmatprep.subr.bf16.mxu1 %v3336_v21 }
  0x38   :  { %2589 = vmatpush3.bf16.msra.mxu0 %v2586_v18  ;;  %v112_v18 = vld [vmem:[#allocation2 + $0x288] sm:$0xff] }
  0x39   :  { %2622 = vmatprep.subr.bf16.mxu0 %v3258_v23 }
  0xee   :  { %v2153_v25 = vpop.f32.mrb[0].mxu0 }
  0xef   :  { %v258_v28 = vadd.f32 %v2153_v25, %v3344_v24  ;;  %v252_v29 = vpop.f32.mrb[1].mxu0  ;;  %v3401_v25 = vpack.c.bf16 %v112_v18, %v109_v17 }
  0xf0   :  { %v253_v32 = vadd.f32 %v252_v29, %v3344_v24  ;;  %v115_v29 = vld [vmem:[#allocation2 + $0x2a0] sm:$0xff] }
  0xf1   :  { %v292_v41 = vmax.f32 %v258_v28, 0.0  ;;  %v3404_v28 = vpack.c.bf16 %v119_v20, %v116_v19  ;;  %v3416_v34 = vpack.c.bf16 %v118_v30, %v115_v29 }
  0xf2   :  { %v291_v36 = vmax.f32 %v253_v32, 0.0  ;;  %v2156_v37 = vpop.f32.mrb[2].mxu0  ;;  %v125_v32 = vld [vmem:[#allocation2 + $0x2f0] sm:$0xff] }
  0xf3   :  { %v3353_v42 = vadd.f32 %v2156_v37, %v3344_v24  ;;  %v262_v43 = vpop.f32.mrb[3].mxu0  ;;  %v114_v37 = vld [vmem:[#allocation2 + $0x298] sm:$0xff]  ;;  %v3419_v39 = vpack.c.bf16 %v125_v32, %v122_v31 }
  0xf4   :  { %v263_v47 = vadd.f32 %v262_v43, %v3344_v24  ;;  %380 = vmatmul.mubr.f32.vlgmr.msra.gmra.mrb[0].mxu1 %v291_v36  ;;  %2195 = vmatprep.mubr.f32.mxu0 %v291_v36  ;;  %v111_v36 = vld [vmem:[#allocation2 + $0x280] sm:$0xff] }
  0xf5   :  { %v294_v48 = vmax.f32 %v3353_v42, 0.0  ;;  %2593 = vmatpush1.bf16.msra.mxu1 %v3348_v35  ;;  %2196 = vmatmul.mubr.f32.vlgmr.msra.gmra.mrb[8].mxu0 %v292_v41  ;;  %v128_v42 = vld [vmem:[#allocation2 + $0x308] sm:$0xff]  ;;  %v131_v43 = vld [vmem:[#allocation2 + $0x320] sm:$0xff]  ;;  %v3425_v44 = vpack.c.bf16 %v114_v37, %v111_v36 }
  0xf6   :  { %v293_v50 = vmax.f32 %v263_v47, 0.0  ;;  %385 = vmatprep.mubr.f32.mxu1 %v3257_v22  ;;  %2595 = vmatprep.subr.bf16.mxu1 %v3350_v38  ;;  %v2159_v51 = vpop.f32.mrb[4].mxu0  ;;  %v117_v47 = vld [vmem:[#allocation2 + $0x2b0] sm:$0xff] }
  0xf7   :  { %v3367_v55 = vadd.f32 %v2159_v51, %v3344_v24  ;;  %v272_v56 = vpop.f32.mrb[5].mxu0  ;;  %2624 = vmatpush3.bf16.msra.mxu0 %v3355_v46  ;;  %v127_v51 = vld [vmem:[#allocation2 + $0x300] sm:$0xff] }
  0xf8   :  { %386 = vmatmul.mubr.f32.gmra.mrb[2].mxu1 %v292_v41  ;;  %2198 = vmatprep.mubr.f32.mxu0 %v293_v50  ;;  %v273_v59 = vadd.f32 %v272_v56, %v3344_v24  ;;  %v124_v41 = vld [vmem:[#allocation2 + $0x2e8] sm:$0xff]  ;;  %v123_v56 = vld [vmem:[#allocation2 + $0x2e0] sm:$0xff] }
  0xf9   :  { %2597 = vmatpush1.bf16.msra.mxu1 %v3360_v49  ;;  %2199 = vmatmul.mubr.f32.gmra.mrb[10].mxu0 %v294_v48  ;;  %v296_v63 = vmax.f32 %v3367_v55, 0.0  ;;  %v3429_v45 = vpack.c.bf16 %v124_v41, %v121_v40  ;;  %v3440_v55 = vpack.c.bf16 %v130_v53, %v127_v51  ;;  %v3447_v58 = vpack.c.bf16 %v126_v57, %v123_v56  ;;  %v3527_v57 = vld [vmem:[%s3811_s2 + $0x2] ss:$0 sm:$0xff] }
  0xfa   :  { %391 = vmatprep.mubr.f32.mxu1 %v3257_v22  ;;  %2599 = vmatprep.subr.bf16.mxu1 %v3364_v52  ;;  %v295_v0 = vmax.f32 %v273_v59, 0.0  ;;  %v2162_v4 = vpop.f32.mrb[6].mxu0  ;;  %v3454_v59 = vld [vmem:[%s3812_s3] sm:$0xff] }
  0xfb   :  { %v3380_v5 = vadd.f32 %v2162_v4, %v3344_v24  ;;  %v282_v8 = vpop.f32.mrb[7].mxu0  ;;  %2625 = vmatprep.subr.bf16.mxu0 %v3258_v23  ;;  %v1934_v4 = vld [vmem:[%s3811_s2 + $0x1] ss:$8 sm:$0x7] }
  0xfc   :  { %392 = vmatmul.mubr.f32.gmra.mrb[4].mxu1 %v293_v50  ;;  %2201 = vmatprep.mubr.f32.mxu0 %v295_v0  ;;  %v283_v10 = vadd.f32 %v282_v8, %v3344_v24  ;;  %v3397_v24 = vpack.c.bf16 %v102_v13, %v99_v12  ;;  %v3432_v50 = vpack.c.bf16 %v131_v43, %v128_v42 }
  0xfd   :  { %2601 = vmatpush1.bf16.msra.mxu1 %v3372_v62  ;;  %397 = vmatprep.mubr.f32.mxu1 %v3257_v22  ;;  %v298_v14 = vmax.f32 %v3380_v5, 0.0 }
  0xfe   :  { %2603 = vmatprep.subr.bf16.mxu1 %v3377_v1  ;;  %2202 = vmatmul.mubr.f32.gmra.mrb[12].mxu0 %v296_v63  ;;  %v297_v16 = vmax.f32 %v283_v10, 0.0 }
  0xff   :  { %2627 = vmatpush3.bf16.msra.mxu0 %v3383_v9 }
 0x100   :  { %398 = vmatmul.mubr.f32.gmra.mrb[6].mxu1 %v294_v48  ;;  %2204 = vmatprep.mubr.f32.mxu0 %v297_v16  ;;  %v120_v48 = vld [vmem:[#allocation2 + $0x2c8] sm:$0xff] }
 0x101   :  { %2605 = vmatpush1.bf16.msra.mxu1 %v3388_v11  ;;  %403 = vmatprep.mubr.f32.mxu1 %v3257_v22  ;;  %v3436_v54 = vpack.c.bf16 %v120_v48, %v117_v47 }
 0x102   :  { %2607 = vmatprep.subr.bf16.mxu1 %v3394_v15  ;;  %2205 = vmatmul.mubr.f32.gmra.mrb[14].mxu0 %v298_v14 }
 0x103   :  { %2628 = vmatprep.subr.bf16.mxu0 %v3258_v23  ;;  %2239 = vmatprep.mubr.msk.f32.mxu0 %vm3259_vm1, %v3257_v22 }
 0x104   :  { %404 = vmatmul.mubr.f32.gmra.mrb[8].mxu1 %v295_v0  ;;  %2630 = vmatpush3.bf16.msra.mxu0 %v3397_v24  ;;  %v300_v0 = vlaneseq }
 0x105   :  { %2609 = vmatpush1.bf16.msra.mxu1 %v3401_v25  ;;  %409 = vmatprep.mubr.f32.mxu1 %v3257_v22 }
 0x106   :  { %2611 = vmatprep.subr.bf16.mxu1 %v3404_v28  ;;  %2631 = vmatprep.subr.bf16.mxu0 %v3258_v23  ;;  %v301_v2 = vshrl.u32 %v300_v0, 7 }
 0x108   :  { %410 = vmatmul.mubr.f32.gmra.mrb[10].mxu1 %v296_v63  ;;  %2633 = vmatpush3.bf16.msra.mxu0 %v3412_v33  ;;  %v3460_v63 = vpack.c.bf16 %v132_v61, %v129_v60  ;;  %v310_v3 = vsub.s32 2, %v301_v2  ;;  %v302_v30 = vsub.s32 0, %v301_v2  ;;  %v306_v37 = vsub.s32 1, %v301_v2 }
 0x109   :  { %2613 = vmatpush1.bf16.msra.mxu1 %v3416_v34  ;;  %415 = vmatprep.mubr.f32.mxu1 %v3257_v22 }
 0x10a   :  { %2615 = vmatprep.subr.bf16.mxu1 %v3419_v39  ;;  %2634 = vmatprep.subr.bf16.mxu0 %v3258_v23  ;;  %v311_v5 = vrot.slane %v1934_v4, %v310_v3  ;;  %v3518_v31 = vrot.slane %v1934_v4, %v302_v30  ;;  %v3521_v42 = vrot.slane %v1934_v4, %v306_v37 }
 0x10c   :  { %416 = vmatmul.mubr.f32.gmra.mrb[12].mxu1 %v297_v16  ;;  %2636 = vmatpush3.bf16.msra.mxu0 %v3425_v44 }
 0x10d   :  { %2617 = vmatpush1.bf16.msra.mxu1 %v3429_v45  ;;  %421 = vmatprep.mubr.f32.mxu1 %v3257_v22 }
 0x10e   :  { %2619 = vmatprep.subr.bf16.mxu1 %v3432_v50  ;;  %2637 = vmatprep.subr.bf16.mxu0 %v3258_v23 }
 0x110   :  { %422 = vmatmul.mubr.f32.gmra.mrb[14].mxu1 %v298_v14  ;;  %2639 = vmatpush3.bf16.msra.mxu0 %v3436_v54 }
 0x111   :  { %2621 = vmatpush1.bf16.msra.mxu1 %v3440_v55  ;;  %599 = vmatprep.mubr.f32.mxu1 %v3257_v22 }
 0x112   :  { %2640 = vmatprep.subr.bf16.mxu0 %v3258_v23  ;;  %2647 = vmatprep.subr.bf16.mxu1 %v3336_v21 }
 0x114   :  { %600 = vmatmul.mubr.f32.vlgmr.msra.gmra.mrb[0].mxu1 %v3454_v59  ;;  %2642 = vmatpush3.bf16.msra.mxu0 %v3447_v58 }
 0x115   :  { %2643 = vmatprep.subr.bf16.mxu0 %v3258_v23  ;;  %2649 = vmatpush1.bf16.msra.mxu1 %v3348_v35 }
 0x116   :  { %2651 = vmatprep.subr.bf16.mxu1 %v3350_v38  ;;  %761 = vmatprep.mubr.f32.mxu1 %v3257_v22 }
 0x118   :  { %2645 = vmatpush3.bf16.msra.mxu0 %v3460_v63 }
 0x119   :  { %2678 = vmatprep.subr.bf16.mxu0 %v3258_v23  ;;  %2653 = vmatpush1.bf16.msra.mxu1 %v3360_v49 }
 0x11a   :  { %2655 = vmatprep.subr.bf16.mxu1 %v3364_v52 }
 0x11b   :  { %2240 = vmatmul.mubr.f32.vlgmr.msra.gmra.mrb[16].mxu0 %v3454_v59 }
 0x11c   :  { %2680 = vmatpush3.bf16.msra.mxu0 %v3355_v46  ;;  %2274 = vmatprep.mubr.msk.f32.mxu0 %vm3259_vm1, %v3257_v22 }
 0x11d   :  { %2681 = vmatprep.subr.bf16.mxu0 %v3258_v23  ;;  %2657 = vmatpush1.bf16.msra.mxu1 %v3372_v62 }
 0x11e   :  { %2659 = vmatprep.subr.bf16.mxu1 %v3377_v1 }
 0x120   :  { %2683 = vmatpush3.bf16.msra.mxu0 %v3383_v9 }
 0x121   :  { %2684 = vmatprep.subr.bf16.mxu0 %v3258_v23  ;;  %2661 = vmatpush1.bf16.msra.mxu1 %v3388_v11 }
 0x122   :  { %2663 = vmatprep.subr.bf16.mxu1 %v3394_v15 }
 0x124   :  { %2686 = vmatpush3.bf16.msra.mxu0 %v3397_v24 }
 0x125   :  { %2687 = vmatprep.subr.bf16.mxu0 %v3258_v23  ;;  %2665 = vmatpush1.bf16.msra.mxu1 %v3401_v25 }
 0x126   :  { %2667 = vmatprep.subr.bf16.mxu1 %v3404_v28 }
 0x128   :  { %2689 = vmatpush3.bf16.msra.mxu0 %v3412_v33 }
 0x129   :  { %2690 = vmatprep.subr.bf16.mxu0 %v3258_v23  ;;  %2669 = vmatpush1.bf16.msra.mxu1 %v3416_v34 }
 0x12a   :  { %2671 = vmatprep.subr.bf16.mxu1 %v3419_v39 }
 0x12c   :  { %2692 = vmatpush3.bf16.msra.mxu0 %v3425_v44 }
 0x12d   :  { %2693 = vmatprep.subr.bf16.mxu0 %v3258_v23  ;;  %2673 = vmatpush1.bf16.msra.mxu1 %v3429_v45 }
 0x12e   :  { %2675 = vmatprep.subr.bf16.mxu1 %v3432_v50 }
 0x130   :  { %2695 = vmatpush3.bf16.msra.mxu0 %v3436_v54 }
 0x131   :  { %2696 = vmatprep.subr.bf16.mxu0 %v3258_v23  ;;  %2677 = vmatpush1.bf16.msra.mxu1 %v3440_v55 }
 0x132   :  { %2703 = vmatprep.subr.bf16.mxu1 %v3336_v21 }
 0x134   :  { %2698 = vmatpush3.bf16.msra.mxu0 %v3447_v58 }
 0x135   :  { %2699 = vmatprep.subr.bf16.mxu0 %v3258_v23 }
 0x138   :  { %2701 = vmatpush3.bf16.msra.mxu0 %v3460_v63 }
 0x139   :  { %2734 = vmatprep.subr.bf16.mxu0 %v3258_v23 }
 0x1c8   :  { %v2197_v6 = vpop.f32.mrb[8].mxu0 }
 0x1c9   :  { %v3504_v7 = vadd.f32 %v2197_v6, %v311_v5  ;;  %v494_v8 = vpop.f32.mrb[9].mxu0 }
 0x1ca   :  { %v495_v2 = vadd.f32 %v494_v8, %v311_v5 }
 0x1cc   :  { %v2200_v10 = vpop.f32.mrb[10].mxu0 }
 0x1cd   :  { %v3506_v12 = vadd.f32 %v2200_v10, %v311_v5  ;;  %v504_v13 = vpop.f32.mrb[11].mxu0 }
 0x1ce   :  { %v3508_v14 = vadd.f32 %v504_v13, %v311_v5 }
 0x1d1   :  { %v2203_v16 = vpop.f32.mrb[12].mxu0 }
 0x1d2   :  { %v3510_v17 = vadd.f32 %v2203_v16, %v311_v5  ;;  %v514_v18 = vpop.f32.mrb[13].mxu0 }
 0x1d3   :  { %v3512_v19 = vadd.f32 %v514_v18, %v311_v5 }
 0x1d5   :  { %v2206_v20 = vpop.f32.mrb[14].mxu0 }
 0x1d6   :  { %v3514_v26 = vadd.f32 %v2206_v20, %v311_v5  ;;  %v524_v27 = vpop.f32.mrb[15].mxu0 }
 0x1d7   :  { %v3516_v29 = vadd.f32 %v524_v27, %v311_v5 }
 0x1e7   :  { %v601_v32 = vpop.f32.mrb[0].mxu1 }
 0x1e8   :  { %v3062_v36 = vadd.f32 %v601_v32, %v3518_v31  ;;  %v603_v40 = vpop.f32.mrb[1].mxu1 }
 0x1e9   :  { %v3063_v48 = vadd.f32 %v603_v40, %v3521_v42 }
 0x1ea   :  { %v1943_v41 = vmul.f32 -1.442695, %v3062_v36 }
 0x1eb   :  { %v1944_v51 = vmul.f32 -1.442695, %v3063_v48 }
 0x1ec   :  { %3102 = vpow2.f32 %v1943_v41 }
 0x1ed   :  { %3104 = vpow2.f32 %v1944_v51 }
 0x1ee   :  { %v672_v43 = vpop.f32.mrb[16].mxu0 }
 0x1ef   :  { %v2241_v47 = vpop.f32.mrb[17].mxu0  ;;  %v690_v60 = vadd.f32 %v672_v43, %v3527_v57 }
 0x1f6   :  { %v3103_v53 = vpop.eup %3102 }
 0x1f7   :  { %v684_v56 = vadd.f32 1.0, %v3103_v53  ;;  %v3105_v61 = vpop.eup %3104 }
 0x1f8   :  { %v685_v4 = vadd.f32 1.0, %v3105_v61 }
 0x1f9   :  { %3106 = vrcp.f32 %v684_v56 }
 0x203   :  { %v3107_v0 = vpop.eup %3106 }
 0x204   :  { %v691_v3 = vmul.f32 %v3107_v0, %v690_v60 }
 0x206   :  { %v692_v6 = vadd.f32 %v691_v3, %v495_v2 }
 0x208   :  { %3108 = vtanh.f32 %v692_v6 }
 0x209   :  { %3110 = vrcp.f32 %v685_v4 }
 0x212   :  { %v3109_v10 = vpop.eup %3108 }
 0x213   :  { %v694_v13 = vsub.f32 %v3454_v59, %v3109_v10  ;;  %v3111_v16 = vpop.eup %3110 }
 0x215   :  { %v695_v18 = vmul.f32 %v3111_v16, %v694_v13 }
 0x217   :  { %v696_v20 = vadd.f32 %v3109_v10, %v695_v18 }
 0x219   :  { %762 = vmatmul.mubr.f32.vlgmr.msra.gmra.mrb[2].mxu1 %v696_v20  ;;  %2275 = vmatmul.mubr.f32.vlgmr.msra.gmra.mrb[18].mxu0 %v696_v20 }
 0x21a   :  { %2705 = vmatpush1.bf16.msra.mxu1 %v3348_v35  ;;  %2736 = vmatpush3.bf16.msra.mxu0 %v3355_v46 }
 0x21b   :  { %2707 = vmatprep.subr.bf16.mxu1 %v3350_v38  ;;  %2737 = vmatprep.subr.bf16.mxu0 %v3258_v23 }
 0x21c   :  { %923 = vmatprep.mubr.f32.mxu1 %v3257_v22  ;;  %2309 = vmatprep.mubr.msk.f32.mxu0 %vm3259_vm1, %v3257_v22 }
 0x21e   :  { %2709 = vmatpush1.bf16.msra.mxu1 %v3360_v49  ;;  %2739 = vmatpush3.bf16.msra.mxu0 %v3383_v9 }
 0x21f   :  { %2711 = vmatprep.subr.bf16.mxu1 %v3364_v52  ;;  %2740 = vmatprep.subr.bf16.mxu0 %v3258_v23 }
 0x222   :  { %2713 = vmatpush1.bf16.msra.mxu1 %v3372_v62  ;;  %2742 = vmatpush3.bf16.msra.mxu0 %v3397_v24 }
 0x223   :  { %2715 = vmatprep.subr.bf16.mxu1 %v3377_v1  ;;  %2743 = vmatprep.subr.bf16.mxu0 %v3258_v23 }
 0x226   :  { %2717 = vmatpush1.bf16.msra.mxu1 %v3388_v11  ;;  %2745 = vmatpush3.bf16.msra.mxu0 %v3412_v33 }
 0x227   :  { %2719 = vmatprep.subr.bf16.mxu1 %v3394_v15  ;;  %2746 = vmatprep.subr.bf16.mxu0 %v3258_v23 }
 0x22a   :  { %2721 = vmatpush1.bf16.msra.mxu1 %v3401_v25  ;;  %2748 = vmatpush3.bf16.msra.mxu0 %v3425_v44 }
 0x22b   :  { %2723 = vmatprep.subr.bf16.mxu1 %v3404_v28  ;;  %2749 = vmatprep.subr.bf16.mxu0 %v3258_v23 }
 0x22e   :  { %2725 = vmatpush1.bf16.msra.mxu1 %v3416_v34  ;;  %2751 = vmatpush3.bf16.msra.mxu0 %v3436_v54 }
 0x22f   :  { %2727 = vmatprep.subr.bf16.mxu1 %v3419_v39  ;;  %2752 = vmatprep.subr.bf16.mxu0 %v3258_v23 }
 0x232   :  { %2729 = vmatpush1.bf16.msra.mxu1 %v3429_v45  ;;  %2754 = vmatpush3.bf16.msra.mxu0 %v3447_v58 }
 0x233   :  { %2731 = vmatprep.subr.bf16.mxu1 %v3432_v50  ;;  %2755 = vmatprep.subr.bf16.mxu0 %v3258_v23 }
 0x236   :  { %2733 = vmatpush1.bf16.msra.mxu1 %v3440_v55  ;;  %2757 = vmatpush3.bf16.msra.mxu0 %v3460_v63 }
 0x237   :  { %2759 = vmatprep.subr.bf16.mxu1 %v3336_v21  ;;  %2790 = vmatprep.subr.bf16.mxu0 %v3258_v23 }
 0x2ec   :  { %v763_v59 = vpop.f32.mrb[2].mxu1  ;;  %v834_v5 = vpop.f32.mrb[18].mxu0 }
 0x2ed   :  { %v3064_v8 = vadd.f32 %v763_v59, %v3518_v31  ;;  %v765_v27 = vpop.f32.mrb[3].mxu1  ;;  %v2276_v30 = vpop.f32.mrb[19].mxu0  ;;  %v852_v47 = vadd.f32 %v834_v5, %v3527_v57 }
 0x2ee   :  { %v3065_v36 = vadd.f32 %v765_v27, %v3521_v42 }
 0x2ef   :  { %v1945_v32 = vmul.f32 -1.442695, %v3064_v8 }
 0x2f0   :  { %v1946_v37 = vmul.f32 -1.442695, %v3065_v36 }
 0x2f1   :  { %3112 = vpow2.f32 %v1945_v32 }
 0x2f2   :  { %3114 = vpow2.f32 %v1946_v37 }
 0x2fb   :  { %v3113_v40 = vpop.eup %3112 }
 0x2fc   :  { %v846_v41 = vadd.f32 1.0, %v3113_v40  ;;  %v3115_v43 = vpop.eup %3114 }
 0x2fd   :  { %v847_v56 = vadd.f32 1.0, %v3115_v43 }
 0x2fe   :  { %3116 = vrcp.f32 %v846_v41 }
 0x308   :  { %v3117_v48 = vpop.eup %3116 }
 0x309   :  { %v853_v51 = vmul.f32 %v3117_v48, %v852_v47 }
 0x30b   :  { %v854_v53 = vadd.f32 %v853_v51, %v3504_v7 }
 0x30d   :  { %3118 = vtanh.f32 %v854_v53 }
 0x30e   :  { %3120 = vrcp.f32 %v847_v56 }
 0x317   :  { %v3119_v60 = vpop.eup %3118 }
 0x318   :  { %v856_v61 = vsub.f32 %v696_v20, %v3119_v60  ;;  %v3121_v0 = vpop.eup %3120 }
 0x31a   :  { %v857_v2 = vmul.f32 %v3121_v0, %v856_v61 }
 0x31c   :  { %v858_v3 = vadd.f32 %v3119_v60, %v857_v2 }
 0x31e   :  { %924 = vmatmul.mubr.f32.vlgmr.msra.gmra.mrb[4].mxu1 %v858_v3  ;;  %2310 = vmatmul.mubr.f32.vlgmr.msra.gmra.mrb[20].mxu0 %v858_v3 }
 0x31f   :  { %2761 = vmatpush1.bf16.msra.mxu1 %v3348_v35  ;;  %2792 = vmatpush3.bf16.msra.mxu0 %v3355_v46 }
 0x320   :  { %2763 = vmatprep.subr.bf16.mxu1 %v3350_v38  ;;  %2793 = vmatprep.subr.bf16.mxu0 %v3258_v23 }
 0x321   :  { %1085 = vmatprep.mubr.f32.mxu1 %v3257_v22  ;;  %2344 = vmatprep.mubr.msk.f32.mxu0 %vm3259_vm1, %v3257_v22 }
 0x323   :  { %2765 = vmatpush1.bf16.msra.mxu1 %v3360_v49  ;;  %2795 = vmatpush3.bf16.msra.mxu0 %v3383_v9 }
 0x324   :  { %2767 = vmatprep.subr.bf16.mxu1 %v3364_v52  ;;  %2796 = vmatprep.subr.bf16.mxu0 %v3258_v23 }
 0x327   :  { %2769 = vmatpush1.bf16.msra.mxu1 %v3372_v62  ;;  %2798 = vmatpush3.bf16.msra.mxu0 %v3397_v24 }
 0x328   :  { %2771 = vmatprep.subr.bf16.mxu1 %v3377_v1  ;;  %2799 = vmatprep.subr.bf16.mxu0 %v3258_v23 }
 0x32b   :  { %2773 = vmatpush1.bf16.msra.mxu1 %v3388_v11  ;;  %2801 = vmatpush3.bf16.msra.mxu0 %v3412_v33 }
 0x32c   :  { %2775 = vmatprep.subr.bf16.mxu1 %v3394_v15  ;;  %2802 = vmatprep.subr.bf16.mxu0 %v3258_v23 }
 0x32f   :  { %2777 = vmatpush1.bf16.msra.mxu1 %v3401_v25  ;;  %2804 = vmatpush3.bf16.msra.mxu0 %v3425_v44 }
 0x330   :  { %2779 = vmatprep.subr.bf16.mxu1 %v3404_v28  ;;  %2805 = vmatprep.subr.bf16.mxu0 %v3258_v23 }
 0x333   :  { %2781 = vmatpush1.bf16.msra.mxu1 %v3416_v34  ;;  %2807 = vmatpush3.bf16.msra.mxu0 %v3436_v54 }
 0x334   :  { %2783 = vmatprep.subr.bf16.mxu1 %v3419_v39  ;;  %2808 = vmatprep.subr.bf16.mxu0 %v3258_v23 }
 0x337   :  { %2785 = vmatpush1.bf16.msra.mxu1 %v3429_v45  ;;  %2810 = vmatpush3.bf16.msra.mxu0 %v3447_v58 }
 0x338   :  { %2787 = vmatprep.subr.bf16.mxu1 %v3432_v50  ;;  %2811 = vmatprep.subr.bf16.mxu0 %v3258_v23 }
 0x33b   :  { %2789 = vmatpush1.bf16.msra.mxu1 %v3440_v55  ;;  %2813 = vmatpush3.bf16.msra.mxu0 %v3460_v63 }
 0x33c   :  { %2815 = vmatprep.subr.bf16.mxu1 %v3336_v21  ;;  %2846 = vmatprep.subr.bf16.mxu0 %v3258_v23 }
 0x3f1   :  { %v925_v7 = vpop.f32.mrb[4].mxu1  ;;  %v996_v4 = vpop.f32.mrb[20].mxu0 }
 0x3f2   :  { %v3066_v6 = vadd.f32 %v925_v7, %v3518_v31  ;;  %v927_v10 = vpop.f32.mrb[5].mxu1  ;;  %v2311_v13 = vpop.f32.mrb[21].mxu0  ;;  %v1014_v27 = vadd.f32 %v996_v4, %v3527_v57 }
 0x3f3   :  { %v3067_v18 = vadd.f32 %v927_v10, %v3521_v42 }
 0x3f4   :  { %v1947_v16 = vmul.f32 -1.442695, %v3066_v6 }
 0x3f5   :  { %v1948_v20 = vmul.f32 -1.442695, %v3067_v18 }
 0x3f6   :  { %3122 = vpow2.f32 %v1947_v16 }
 0x3f7   :  { %3124 = vpow2.f32 %v1948_v20 }
 0x400   :  { %v3123_v59 = vpop.eup %3122 }
 0x401   :  { %v1008_v5 = vadd.f32 1.0, %v3123_v59  ;;  %v3125_v8 = vpop.eup %3124 }
 0x402   :  { %v1009_v37 = vadd.f32 1.0, %v3125_v8 }
 0x403   :  { %3126 = vrcp.f32 %v1008_v5 }
 0x40d   :  { %v3127_v30 = vpop.eup %3126 }
 0x40e   :  { %v1015_v32 = vmul.f32 %v3127_v30, %v1014_v27 }
 0x410   :  { %v1016_v36 = vadd.f32 %v1015_v32, %v3508_v14 }
 0x412   :  { %3128 = vtanh.f32 %v1016_v36 }
 0x413   :  { %3130 = vrcp.f32 %v1009_v37 }
 0x41c   :  { %v3129_v40 = vpop.eup %3128 }
 0x41d   :  { %v1018_v41 = vsub.f32 %v858_v3, %v3129_v40  ;;  %v3131_v43 = vpop.eup %3130 }
 0x41f   :  { %v1019_v47 = vmul.f32 %v3131_v43, %v1018_v41 }
 0x421   :  { %v1020_v48 = vadd.f32 %v3129_v40, %v1019_v47 }
 0x423   :  { %1086 = vmatmul.mubr.f32.vlgmr.msra.gmra.mrb[6].mxu1 %v1020_v48  ;;  %2345 = vmatmul.mubr.f32.vlgmr.msra.gmra.mrb[22].mxu0 %v1020_v48 }
 0x424   :  { %2817 = vmatpush1.bf16.msra.mxu1 %v3348_v35  ;;  %2848 = vmatpush3.bf16.msra.mxu0 %v3355_v46 }
 0x425   :  { %2819 = vmatprep.subr.bf16.mxu1 %v3350_v38  ;;  %2849 = vmatprep.subr.bf16.mxu0 %v3258_v23 }
 0x426   :  { %1247 = vmatprep.mubr.f32.mxu1 %v3257_v22  ;;  %2379 = vmatprep.mubr.msk.f32.mxu0 %vm3259_vm1, %v3257_v22 }
 0x428   :  { %2821 = vmatpush1.bf16.msra.mxu1 %v3360_v49  ;;  %2851 = vmatpush3.bf16.msra.mxu0 %v3383_v9 }
 0x429   :  { %2823 = vmatprep.subr.bf16.mxu1 %v3364_v52  ;;  %2852 = vmatprep.subr.bf16.mxu0 %v3258_v23 }
 0x42c   :  { %2825 = vmatpush1.bf16.msra.mxu1 %v3372_v62  ;;  %2854 = vmatpush3.bf16.msra.mxu0 %v3397_v24 }
 0x42d   :  { %2827 = vmatprep.subr.bf16.mxu1 %v3377_v1  ;;  %2855 = vmatprep.subr.bf16.mxu0 %v3258_v23 }
 0x430   :  { %2829 = vmatpush1.bf16.msra.mxu1 %v3388_v11  ;;  %2857 = vmatpush3.bf16.msra.mxu0 %v3412_v33 }
 0x431   :  { %2831 = vmatprep.subr.bf16.mxu1 %v3394_v15  ;;  %2858 = vmatprep.subr.bf16.mxu0 %v3258_v23 }
 0x434   :  { %2833 = vmatpush1.bf16.msra.mxu1 %v3401_v25  ;;  %2860 = vmatpush3.bf16.msra.mxu0 %v3425_v44 }
 0x435   :  { %2835 = vmatprep.subr.bf16.mxu1 %v3404_v28  ;;  %2861 = vmatprep.subr.bf16.mxu0 %v3258_v23 }
 0x438   :  { %2837 = vmatpush1.bf16.msra.mxu1 %v3416_v34  ;;  %2863 = vmatpush3.bf16.msra.mxu0 %v3436_v54 }
 0x439   :  { %2839 = vmatprep.subr.bf16.mxu1 %v3419_v39  ;;  %2864 = vmatprep.subr.bf16.mxu0 %v3258_v23 }
 0x43c   :  { %2841 = vmatpush1.bf16.msra.mxu1 %v3429_v45  ;;  %2866 = vmatpush3.bf16.msra.mxu0 %v3447_v58 }
 0x43d   :  { %2843 = vmatprep.subr.bf16.mxu1 %v3432_v50  ;;  %2867 = vmatprep.subr.bf16.mxu0 %v3258_v23 }
 0x440   :  { %2845 = vmatpush1.bf16.msra.mxu1 %v3440_v55  ;;  %2869 = vmatpush3.bf16.msra.mxu0 %v3460_v63 }
 0x441   :  { %2871 = vmatprep.subr.bf16.mxu1 %v3336_v21  ;;  %2902 = vmatprep.subr.bf16.mxu0 %v3258_v23 }
 0x4f6   :  { %v1087_v14 = vpop.f32.mrb[6].mxu1  ;;  %v1158_v51 = vpop.f32.mrb[22].mxu0 }
 0x4f7   :  { %v3068_v53 = vadd.f32 %v1087_v14, %v3518_v31  ;;  %v1089_v56 = vpop.f32.mrb[7].mxu1  ;;  %v2346_v60 = vpop.f32.mrb[23].mxu0  ;;  %v1176_v6 = vadd.f32 %v1158_v51, %v3527_v57 }
 0x4f8   :  { %v3069_v0 = vadd.f32 %v1089_v56, %v3521_v42 }
 0x4f9   :  { %v1949_v61 = vmul.f32 -1.442695, %v3068_v53 }
 0x4fa   :  { %v1950_v2 = vmul.f32 -1.442695, %v3069_v0 }
 0x4fb   :  { %3132 = vpow2.f32 %v1949_v61 }
 0x4fc   :  { %3134 = vpow2.f32 %v1950_v2 }
 0x505   :  { %v3133_v3 = vpop.eup %3132 }
 0x506   :  { %v1170_v7 = vadd.f32 1.0, %v3133_v3  ;;  %v3135_v4 = vpop.eup %3134 }
 0x507   :  { %v1171_v18 = vadd.f32 1.0, %v3135_v4 }
 0x508   :  { %3136 = vrcp.f32 %v1170_v7 }
 0x512   :  { %v3137_v10 = vpop.eup %3136 }
 0x513   :  { %v1177_v13 = vmul.f32 %v3137_v10, %v1176_v6 }
 0x515   :  { %v1178_v16 = vadd.f32 %v1177_v13, %v3506_v12 }
 0x517   :  { %3138 = vtanh.f32 %v1178_v16 }
 0x518   :  { %3140 = vrcp.f32 %v1171_v18 }
 0x521   :  { %v3139_v20 = vpop.eup %3138 }
 0x522   :  { %v1180_v59 = vsub.f32 %v1020_v48, %v3139_v20  ;;  %v3141_v5 = vpop.eup %3140 }
 0x524   :  { %v1181_v8 = vmul.f32 %v3141_v5, %v1180_v59 }
 0x526   :  { %v1182_v27 = vadd.f32 %v3139_v20, %v1181_v8 }
 0x528   :  { %1248 = vmatmul.mubr.f32.vlgmr.msra.gmra.mrb[8].mxu1 %v1182_v27  ;;  %2380 = vmatmul.mubr.f32.vlgmr.msra.gmra.mrb[24].mxu0 %v1182_v27 }
 0x529   :  { %2873 = vmatpush1.bf16.msra.mxu1 %v3348_v35  ;;  %2904 = vmatpush3.bf16.msra.mxu0 %v3355_v46 }
 0x52a   :  { %2875 = vmatprep.subr.bf16.mxu1 %v3350_v38  ;;  %2905 = vmatprep.subr.bf16.mxu0 %v3258_v23 }
 0x52b   :  { %1409 = vmatprep.mubr.f32.mxu1 %v3257_v22  ;;  %2414 = vmatprep.mubr.msk.f32.mxu0 %vm3259_vm1, %v3257_v22 }
 0x52d   :  { %2877 = vmatpush1.bf16.msra.mxu1 %v3360_v49  ;;  %2907 = vmatpush3.bf16.msra.mxu0 %v3383_v9 }
 0x52e   :  { %2879 = vmatprep.subr.bf16.mxu1 %v3364_v52  ;;  %2908 = vmatprep.subr.bf16.mxu0 %v3258_v23 }
 0x531   :  { %2881 = vmatpush1.bf16.msra.mxu1 %v3372_v62  ;;  %2910 = vmatpush3.bf16.msra.mxu0 %v3397_v24 }
 0x532   :  { %2883 = vmatprep.subr.bf16.mxu1 %v3377_v1  ;;  %2911 = vmatprep.subr.bf16.mxu0 %v3258_v23 }
 0x535   :  { %2885 = vmatpush1.bf16.msra.mxu1 %v3388_v11  ;;  %2913 = vmatpush3.bf16.msra.mxu0 %v3412_v33 }
 0x536   :  { %2887 = vmatprep.subr.bf16.mxu1 %v3394_v15  ;;  %2914 = vmatprep.subr.bf16.mxu0 %v3258_v23 }
 0x539   :  { %2889 = vmatpush1.bf16.msra.mxu1 %v3401_v25  ;;  %2916 = vmatpush3.bf16.msra.mxu0 %v3425_v44 }
 0x53a   :  { %2891 = vmatprep.subr.bf16.mxu1 %v3404_v28  ;;  %2917 = vmatprep.subr.bf16.mxu0 %v3258_v23 }
 0x53d   :  { %2893 = vmatpush1.bf16.msra.mxu1 %v3416_v34  ;;  %2919 = vmatpush3.bf16.msra.mxu0 %v3436_v54 }
 0x53e   :  { %2895 = vmatprep.subr.bf16.mxu1 %v3419_v39  ;;  %2920 = vmatprep.subr.bf16.mxu0 %v3258_v23 }
 0x541   :  { %2897 = vmatpush1.bf16.msra.mxu1 %v3429_v45  ;;  %2922 = vmatpush3.bf16.msra.mxu0 %v3447_v58 }
 0x542   :  { %2899 = vmatprep.subr.bf16.mxu1 %v3432_v50  ;;  %2923 = vmatprep.subr.bf16.mxu0 %v3258_v23 }
 0x545   :  { %2901 = vmatpush1.bf16.msra.mxu1 %v3440_v55  ;;  %2925 = vmatpush3.bf16.msra.mxu0 %v3460_v63 }
 0x546   :  { %2927 = vmatprep.subr.bf16.mxu1 %v3336_v21  ;;  %2958 = vmatprep.subr.bf16.mxu0 %v3258_v23 }
 0x5fb   :  { %v1249_v12 = vpop.f32.mrb[8].mxu1  ;;  %v1320_v30 = vpop.f32.mrb[24].mxu0 }
 0x5fc   :  { %v3070_v32 = vadd.f32 %v1249_v12, %v3518_v31  ;;  %v1251_v36 = vpop.f32.mrb[9].mxu1  ;;  %v2381_v37 = vpop.f32.mrb[25].mxu0  ;;  %v1338_v51 = vadd.f32 %v1320_v30, %v3527_v57 }
 0x5fd   :  { %v3071_v41 = vadd.f32 %v1251_v36, %v3521_v42 }
 0x5fe   :  { %v1951_v40 = vmul.f32 -1.442695, %v3070_v32 }
 0x5ff   :  { %v1952_v43 = vmul.f32 -1.442695, %v3071_v41 }
 0x600   :  { %3142 = vpow2.f32 %v1951_v40 }
 0x601   :  { %3144 = vpow2.f32 %v1952_v43 }
 0x60a   :  { %v3143_v47 = vpop.eup %3142 }
 0x60b   :  { %v1332_v48 = vadd.f32 1.0, %v3143_v47  ;;  %v3145_v14 = vpop.eup %3144 }
 0x60c   :  { %v1333_v61 = vadd.f32 1.0, %v3145_v14 }
 0x60d   :  { %3146 = vrcp.f32 %v1332_v48  ;;  %v136_v48 = vld [vmem:[#allocation2 + $0x378] sm:$0xff] }
 0x617   :  { %v3147_v53 = vpop.eup %3146 }
 0x618   :  { %v1339_v56 = vmul.f32 %v3147_v53, %v1338_v51  ;;  %v137_v51 = vld [vmem:[#allocation2 + $0x390] sm:$0xff]  ;;  %v138_v53 = vld [vmem:[#allocation2 + $0x3a8] sm:$0xff] }
 0x61a   :  { %v1340_v60 = vadd.f32 %v1339_v56, %v3512_v19  ;;  %v3045_v56 = vpack.c.bf16 %v138_v53, %v137_v51 }
 0x61c   :  { %3148 = vtanh.f32 %v1340_v60  ;;  %v139_v60 = vld [vmem:[#allocation2 + $0x3c0] sm:$0xff] }
 0x61d   :  { %3150 = vrcp.f32 %v1333_v61 }
 0x626   :  { %v3149_v0 = vpop.eup %3148 }
 0x627   :  { %v1342_v2 = vsub.f32 %v1182_v27, %v3149_v0  ;;  %v3151_v3 = vpop.eup %3150 }
 0x629   :  { %v1343_v7 = vmul.f32 %v3151_v3, %v1342_v2  ;;  %v142_v2 = vld [vmem:[#allocation2 + $0x408] sm:$0xff] }
 0x62b   :  { %v1344_v4 = vadd.f32 %v3149_v0, %v1343_v7  ;;  %v141_v0 = vld [vmem:[#allocation2 + $0x3f0] sm:$0xff]  ;;  %v143_v7 = vld [vmem:[#allocation2 + $0x420] sm:$0xff] }
 0x62c   :  { %v3051_v3 = vpack.c.bf16 %v142_v2, %v141_v0 }
 0x62d   :  { %1410 = vmatmul.mubr.f32.vlgmr.msra.gmra.mrb[10].mxu1 %v1344_v4  ;;  %2415 = vmatmul.mubr.f32.vlgmr.msra.gmra.mrb[26].mxu0 %v1344_v4 }
 0x62e   :  { %2929 = vmatpush1.bf16.msra.mxu1 %v3348_v35  ;;  %2960 = vmatpush3.bf16.msra.mxu0 %v3355_v46 }
 0x62f   :  { %2931 = vmatprep.subr.bf16.mxu1 %v3350_v38  ;;  %2961 = vmatprep.subr.bf16.mxu0 %v3258_v23 }
 0x630   :  { %1571 = vmatprep.mubr.f32.mxu1 %v3257_v22  ;;  %2449 = vmatprep.mubr.msk.f32.mxu0 %vm3259_vm1, %v3257_v22 }
 0x632   :  { %2933 = vmatpush1.bf16.msra.mxu1 %v3360_v49  ;;  %2963 = vmatpush3.bf16.msra.mxu0 %v3383_v9 }
 0x633   :  { %2935 = vmatprep.subr.bf16.mxu1 %v3364_v52  ;;  %2964 = vmatprep.subr.bf16.mxu0 %v3258_v23 }
 0x636   :  { %2937 = vmatpush1.bf16.msra.mxu1 %v3372_v62  ;;  %2966 = vmatpush3.bf16.msra.mxu0 %v3397_v24 }
 0x637   :  { %2939 = vmatprep.subr.bf16.mxu1 %v3377_v1  ;;  %2967 = vmatprep.subr.bf16.mxu0 %v3258_v23 }
 0x63a   :  { %2941 = vmatpush1.bf16.msra.mxu1 %v3388_v11  ;;  %2969 = vmatpush3.bf16.msra.mxu0 %v3412_v33 }
 0x63b   :  { %2943 = vmatprep.subr.bf16.mxu1 %v3394_v15  ;;  %2970 = vmatprep.subr.bf16.mxu0 %v3258_v23 }
 0x63e   :  { %2945 = vmatpush1.bf16.msra.mxu1 %v3401_v25  ;;  %2972 = vmatpush3.bf16.msra.mxu0 %v3425_v44 }
 0x63f   :  { %2947 = vmatprep.subr.bf16.mxu1 %v3404_v28  ;;  %2973 = vmatprep.subr.bf16.mxu0 %v3258_v23 }
 0x642   :  { %2949 = vmatpush1.bf16.msra.mxu1 %v3416_v34  ;;  %2975 = vmatpush3.bf16.msra.mxu0 %v3436_v54 }
 0x643   :  { %2951 = vmatprep.subr.bf16.mxu1 %v3419_v39  ;;  %2976 = vmatprep.subr.bf16.mxu0 %v3258_v23 }
 0x646   :  { %2953 = vmatpush1.bf16.msra.mxu1 %v3429_v45  ;;  %2978 = vmatpush3.bf16.msra.mxu0 %v3447_v58 }
 0x647   :  { %2955 = vmatprep.subr.bf16.mxu1 %v3432_v50  ;;  %2979 = vmatprep.subr.bf16.mxu0 %v3258_v23 }
 0x64a   :  { %2957 = vmatpush1.bf16.msra.mxu1 %v3440_v55  ;;  %2981 = vmatpush3.bf16.msra.mxu0 %v3460_v63 }
 0x64b   :  { %2983 = vmatprep.subr.bf16.mxu1 %v3336_v21  ;;  %3014 = vmatprep.subr.bf16.mxu0 %v3258_v23 }
 0x700   :  { %v1411_v19 = vpop.f32.mrb[10].mxu1  ;;  %v1482_v6 = vpop.f32.mrb[26].mxu0 }
 0x701   :  { %v3072_v10 = vadd.f32 %v1411_v19, %v3518_v31  ;;  %v1413_v13 = vpop.f32.mrb[11].mxu1  ;;  %v2416_v16 = vpop.f32.mrb[27].mxu0  ;;  %v1500_v21 = vadd.f32 %v1482_v6, %v3527_v57  ;;  %v145_v6 = vld [vmem:[#allocation2 + $0x450] sm:$0xff] }
 0x702   :  { %v3073_v20 = vadd.f32 %v1413_v13, %v3521_v42  ;;  %v147_v16 = vld [vmem:[#allocation2 + $0x480] sm:$0xff] }
 0x703   :  { %v1953_v18 = vmul.f32 -1.442695, %v3072_v10  ;;  %v146_v10 = vld [vmem:[#allocation2 + $0x468] sm:$0xff] }
 0x704   :  { %v1954_v59 = vmul.f32 -1.442695, %v3073_v20  ;;  %v3057_v13 = vpack.c.bf16 %v146_v10, %v145_v6 }
 0x705   :  { %3152 = vpow2.f32 %v1953_v18  ;;  %v148_v18 = vld [vmem:[#allocation2 + $0x498] sm:$0xff] }
 0x706   :  { %3154 = vpow2.f32 %v1954_v59  ;;  %v3060_v20 = vpack.c.bf16 %v148_v18, %v147_v16 }
 0x70f   :  { %v3153_v5 = vpop.eup %3152 }
 0x710   :  { %v1494_v8 = vadd.f32 1.0, %v3153_v5  ;;  %v3155_v27 = vpop.eup %3154 }
 0x711   :  { %v1495_v36 = vadd.f32 1.0, %v3155_v27 }
 0x712   :  { %3156 = vrcp.f32 %v1494_v8 }
 0x71c   :  { %v3157_v12 = vpop.eup %3156 }
 0x71d   :  { %v1501_v30 = vmul.f32 %v3157_v12, %v1500_v21 }
 0x71f   :  { %v1502_v32 = vadd.f32 %v1501_v30, %v3510_v17 }
 0x721   :  { %3158 = vtanh.f32 %v1502_v32 }
 0x722   :  { %3160 = vrcp.f32 %v1495_v36 }
 0x72b   :  { %v3159_v37 = vpop.eup %3158 }
 0x72c   :  { %v1504_v40 = vsub.f32 %v1344_v4, %v3159_v37  ;;  %v3161_v41 = vpop.eup %3160  ;;  %v144_v4 = vld [vmem:[#allocation2 + $0x438] sm:$0xff] }
 0x72d   :  { %v3054_v19 = vpack.c.bf16 %v144_v4, %v143_v7 }
 0x72e   :  { %v1505_v43 = vmul.f32 %v3161_v41, %v1504_v40 }
 0x730   :  { %v1506_v47 = vadd.f32 %v3159_v37, %v1505_v43 }
 0x732   :  { %1572 = vmatmul.mubr.f32.vlgmr.msra.gmra.mrb[12].mxu1 %v1506_v47  ;;  %2450 = vmatmul.mubr.f32.vlgmr.msra.gmra.mrb[28].mxu0 %v1506_v47 }
 0x733   :  { %2985 = vmatpush1.bf16.msra.mxu1 %v3348_v35  ;;  %3016 = vmatpush3.bf16.msra.mxu0 %v3355_v46 }
 0x734   :  { %2987 = vmatprep.subr.bf16.mxu1 %v3350_v38  ;;  %3017 = vmatprep.subr.bf16.mxu0 %v3258_v23 }
 0x735   :  { %1733 = vmatprep.mubr.f32.mxu1 %v3257_v22  ;;  %2484 = vmatprep.mubr.msk.f32.mxu0 %vm3259_vm1, %v3257_v22 }
 0x737   :  { %2989 = vmatpush1.bf16.msra.mxu1 %v3360_v49  ;;  %3019 = vmatpush3.bf16.msra.mxu0 %v3383_v9 }
 0x738   :  { %2991 = vmatprep.subr.bf16.mxu1 %v3364_v52  ;;  %3020 = vmatprep.subr.bf16.mxu0 %v3258_v23 }
 0x73b   :  { %2993 = vmatpush1.bf16.msra.mxu1 %v3372_v62  ;;  %3022 = vmatpush3.bf16.msra.mxu0 %v3397_v24 }
 0x73c   :  { %2995 = vmatprep.subr.bf16.mxu1 %v3377_v1  ;;  %3023 = vmatprep.subr.bf16.mxu0 %v3258_v23 }
 0x73f   :  { %2997 = vmatpush1.bf16.msra.mxu1 %v3388_v11  ;;  %3025 = vmatpush3.bf16.msra.mxu0 %v3412_v33 }
 0x740   :  { %2999 = vmatprep.subr.bf16.mxu1 %v3394_v15  ;;  %3026 = vmatprep.subr.bf16.mxu0 %v3258_v23 }
 0x743   :  { %3001 = vmatpush1.bf16.msra.mxu1 %v3401_v25  ;;  %3028 = vmatpush3.bf16.msra.mxu0 %v3425_v44 }
 0x744   :  { %3003 = vmatprep.subr.bf16.mxu1 %v3404_v28  ;;  %3029 = vmatprep.subr.bf16.mxu0 %v3258_v23 }
 0x747   :  { %3005 = vmatpush1.bf16.msra.mxu1 %v3416_v34  ;;  %3031 = vmatpush3.bf16.msra.mxu0 %v3436_v54 }
 0x748   :  { %3007 = vmatprep.subr.bf16.mxu1 %v3419_v39  ;;  %3032 = vmatprep.subr.bf16.mxu0 %v3258_v23 }
 0x74b   :  { %3009 = vmatpush1.bf16.msra.mxu1 %v3429_v45  ;;  %3034 = vmatpush3.bf16.msra.mxu0 %v3447_v58  ;;  %v133_v58 = vld [vmem:[#allocation2 + $0x330] sm:$0xff] }
 0x74c   :  { %3011 = vmatprep.subr.bf16.mxu1 %v3432_v50  ;;  %3035 = vmatprep.subr.bf16.mxu0 %v3258_v23 }
 0x74f   :  { %3013 = vmatpush1.bf16.msra.mxu1 %v3440_v55  ;;  %3037 = vmatpush3.bf16.msra.mxu0 %v3460_v63  ;;  %v134_v63 = vld [vmem:[#allocation2 + $0x348] sm:$0xff] }
 0x750   :  { %3038 = vmatprep.subr.bf16.mxu1 %v3258_v23  ;;  %v3039_v17 = vpack.c.bf16 %v134_v63, %v133_v58 }
 0x805   :  { %v1573_v35 = vpop.f32.mrb[12].mxu1  ;;  %v1644_v38 = vpop.f32.mrb[28].mxu0 }
 0x806   :  { %v3074_v46 = vadd.f32 %v1573_v35, %v3518_v31  ;;  %v1575_v49 = vpop.f32.mrb[13].mxu1  ;;  %v2451_v52 = vpop.f32.mrb[29].mxu0  ;;  %v1662_v25 = vadd.f32 %v1644_v38, %v3527_v57 }
 0x807   :  { %v3075_v1 = vadd.f32 %v1575_v49, %v3521_v42 }
 0x808   :  { %v1955_v62 = vmul.f32 -1.442695, %v3074_v46 }
 0x809   :  { %v1956_v9 = vmul.f32 -1.442695, %v3075_v1 }
 0x80a   :  { %3162 = vpow2.f32 %v1955_v62 }
 0x80b   :  { %3164 = vpow2.f32 %v1956_v9 }
 0x814   :  { %v3163_v11 = vpop.eup %3162 }
 0x815   :  { %v1656_v15 = vadd.f32 1.0, %v3163_v11  ;;  %v3165_v24 = vpop.eup %3164 }
 0x816   :  { %v1657_v39 = vadd.f32 1.0, %v3165_v24 }
 0x817   :  { %3166 = vrcp.f32 %v1656_v15 }
 0x821   :  { %v3167_v28 = vpop.eup %3166 }
 0x822   :  { %v1663_v33 = vmul.f32 %v3167_v28, %v1662_v25 }
 0x824   :  { %v1664_v34 = vadd.f32 %v1663_v33, %v3516_v29  ;;  %v135_v29 = vld [vmem:[#allocation2 + $0x360] sm:$0xff] }
 0x825   :  { %v3042_v14 = vpack.c.bf16 %v136_v48, %v135_v29 }
 0x826   :  { %3168 = vtanh.f32 %v1664_v34 }
 0x827   :  { %3170 = vrcp.f32 %v1657_v39 }
 0x830   :  { %v3169_v44 = vpop.eup %3168 }
 0x831   :  { %v1666_v45 = vsub.f32 %v1506_v47, %v3169_v44  ;;  %v3171_v50 = vpop.eup %3170 }
 0x833   :  { %v1667_v54 = vmul.f32 %v3171_v50, %v1666_v45 }
 0x835   :  { %v3764_v55 = vadd.f32 %v3169_v44, %v1667_v54 }
 0x837   :  { %1734 = vmatmul.mubr.f32.vlgmr.msra.gmra.mrb[14].mxu1 %v3764_v55  ;;  %2485 = vmatmul.mubr.f32.vlgmr.msra.gmra.mrb[30].mxu0 %v3764_v55 }
 0x838   :  { %2519 = vmatprep.mubr.msk.f32.mxu1 %vm3259_vm1, %v3257_v22  ;;  %3040 = vmatpush3.bf16.msra.mxu1 %v3039_v17  ;;  %v140_v22 = vld [vmem:[#allocation2 + $0x3d8] sm:$0xff] }
 0x839   :  { %3041 = vmatprep.subr.bf16.mxu1 %v3258_v23  ;;  %v3048_v61 = vpack.c.bf16 %v140_v22, %v139_v60 }
 0x83c   :  { %3043 = vmatpush3.bf16.msra.mxu1 %v3042_v14 }
 0x83d   :  { %3044 = vmatprep.subr.bf16.mxu1 %v3258_v23 }
 0x840   :  { %3046 = vmatpush3.bf16.msra.mxu1 %v3045_v56 }
 0x841   :  { %3047 = vmatprep.subr.bf16.mxu1 %v3258_v23 }
 0x844   :  { %3049 = vmatpush3.bf16.msra.mxu1 %v3048_v61 }
 0x845   :  { %3050 = vmatprep.subr.bf16.mxu1 %v3258_v23 }
 0x848   :  { %3052 = vmatpush3.bf16.msra.mxu1 %v3051_v3 }
 0x849   :  { %3053 = vmatprep.subr.bf16.mxu1 %v3258_v23 }
 0x84c   :  { %3055 = vmatpush3.bf16.msra.mxu1 %v3054_v19 }
 0x84d   :  { %3056 = vmatprep.subr.bf16.mxu1 %v3258_v23 }
 0x850   :  { %3058 = vmatpush3.bf16.msra.mxu1 %v3057_v13 }
 0x851   :  { %3059 = vmatprep.subr.bf16.mxu1 %v3258_v23 }
 0x854   :  { %3061 = vmatpush3.bf16.msra.mxu1 %v3060_v20 }
 0x90a   :  { %v1735_v59 = vpop.f32.mrb[14].mxu1  ;;  %v1806_v5 = vpop.f32.mrb[30].mxu0 }
 0x90b   :  { %v3076_v8 = vadd.f32 %v1735_v59, %v3518_v31  ;;  %v1737_v27 = vpop.f32.mrb[15].mxu1  ;;  %v2486_v21 = vpop.f32.mrb[31].mxu0  ;;  %v1824_v41 = vadd.f32 %v1806_v5, %v3527_v57 }
 0x90c   :  { %v3077_v30 = vadd.f32 %v1737_v27, %v3521_v42 }
 0x90d   :  { %v1957_v12 = vmul.f32 -1.442695, %v3076_v8 }
 0x90e   :  { %v1958_v32 = vmul.f32 -1.442695, %v3077_v30 }
 0x90f   :  { %3172 = vpow2.f32 %v1957_v12 }
 0x910   :  { %3174 = vpow2.f32 %v1958_v32 }
 0x919   :  { %v3173_v36 = vpop.eup %3172 }
 0x91a   :  { %v1818_v37 = vadd.f32 1.0, %v3173_v36  ;;  %v3175_v40 = vpop.eup %3174 }
 0x91b   :  { %v1819_v35 = vadd.f32 1.0, %v3175_v40 }
 0x91c   :  { %3176 = vrcp.f32 %v1818_v37 }
 0x926   :  { %v3177_v23 = vpop.eup %3176 }
 0x927   :  { %v1825_v43 = vmul.f32 %v3177_v23, %v1824_v41 }
 0x929   :  { %v1826_v47 = vadd.f32 %v1825_v43, %v3514_v26 }
 0x92b   :  { %3178 = vtanh.f32 %v1826_v47 }
 0x92c   :  { %3180 = vrcp.f32 %v1819_v35 }
 0x935   :  { %v3179_v31 = vpop.eup %3178 }
 0x936   :  { %v1828_v38 = vsub.f32 %v3764_v55, %v3179_v31  ;;  %v3181_v46 = vpop.eup %3180 }
 0x938   :  { %v1829_v42 = vmul.f32 %v3181_v46, %v1828_v38 }
 0x93a   :  { %v1830_v49 = vadd.f32 %v3179_v31, %v1829_v42 }
 0x93c   :  { %2520 = vmatmul.mubr.f32.vlgmr.msra.gmra.mrb[16].mxu1 %v1830_v49  ;;  %1831 = vst [vmem:[#allocation6] sm:$0xff] %v1830_v49 }
 0x93d   :  { %3215 = shalt.err (!%p3212_p12)
}
 0x93e   :  { %s3216_s8 = scalar_lea.hbm %s3814_s5, 128 }
 0x93f   :  { %p3217_p13 = scmp.ne.s32.totalorder %s3814_s5, %s3216_s8  ;;  %p3220_p0 = scmp.lt.u32.totalorder %s3216_s8, %s3814_s5 }
 0x941   :  { %p3222_p1 = pnand %p3220_p0, %p3217_p13 }
 0x943   :  { %3225 = shalt.err (!%p3222_p1)
}
 0x944   :  { %1924 = dma.vmem_to_hbm [thread:$0]  %s1922_s29, 128, %s3814_s5, [#allocation7]   ;;  %v152_v26 = vld [vmem:[%s3811_s2 + $0x3] ss:$0 sm:$0xff] }
 0x945   :  { %s3261_s16 = smov [#allocation5]  }
 0x946   :  { %s1911_s17 = sshll.u32 %s3261_s16, 4  ;;  %s1912_s17 = int_to_ptr.vmem [resolvable:$true] %s1911_s17 }
 0x947   :  { %s3226_s18 = scalar_lea.vmem %s1912_s17, 128  ;;  %p3231_p3 = scmp.lt.s32.totalorder %s1912_s17, %s1912_s17 }
 0x948   :  { %p3227_p2 = scmp.ne.s32.totalorder %s1912_s17, %s3226_s18  ;;  %p3232_p4 = scmp.lt.s32.totalorder %s3226_s18, %s3226_s18 }
 0x94a   :  { %p3233_p5 = por %p3232_p4, %p3231_p3 }
 0x94c   :  { %p3234_p6 = pnand %p3233_p5, %p3227_p2 }
 0xa0f   :  { %v1898_v57 = vpop.f32.mrb[16].mxu1 }
 0xa10   :  { %v1899_v52 = vadd.f32 %v1898_v57, %v152_v26  ;;  %v2521_v62 = vpop.f32.mrb[17].mxu1 }
 0xa12   :  { %v1959_v1 = vclamps-f32 %v1899_v52, 2.0 }
 0xa14   :  { %1904 = vst [vmem:[#allocation5] sm:$0xff] %v1959_v1 }
 0xa15   :  { %3237 = shalt.err (!%p3234_p6)
}
 0xa16   :  { %s3238_s20 = scalar_lea.hbm %s3813_s4, 128 }
 0xa17   :  { %p3239_p7 = scmp.ne.s32.totalorder %s3813_s4, %s3238_s20  ;;  %p3242_p8 = scmp.lt.u32.totalorder %s3238_s20, %s3813_s4 }
 0xa19   :  { %p3244_p9 = pnand %p3242_p8, %p3239_p7 }
 0xa1b   :  { %3247 = shalt.err (!%p3244_p9)
}
 0xa1c   :  { %1914 = dma.vmem_to_hbm [thread:$0]  %s1912_s17, 128, %s3813_s4, [#allocation4]  }
 0xa1d   :  { %3250 = dma.done.wait [#allocation4], 128  }
 0xa1e   :  { %3251 = vsyncadd [#allocation4], 4294967168 }
 0xa1f   :  { %3252 = dma.done.wait [#allocation7], 128  }
 0xa20   :  { %3253 = vsyncadd [#allocation7], 4294967168 }
 0xa21   :  { %1931 = vsyncpa [#allocation3], 1 }
 0xa22   :  { %1932 = vsyncpa [#allocation4], 1 }
 0xa23   :  { %1933 = vsyncpa [#allocation7], 1 }

</bundles_post_ra>
